<compile_context>
chip_gen: v7x
topology: tpu7x:2x2x1
jax: 0.10.0
libtpu: 0.0.40
codegen_flags: <defaults>
</compile_context>

<pallas_src>
import functools
import math
from typing import NamedTuple

import jax
import jax.numpy as jnp
from jax.experimental import pallas as pl
from jax.experimental.pallas import tpu as pltpu

BN_EPS = 1e-5
_PACK_TARGET = 16            # packed nodes per row (multiple of 128/gcd(H,128))
_VMEM_TILE_BUDGET = 36 << 20  # budget for double-buffered in+out tiles


def _round_up(a, b):
    return (a + b - 1) // b * b


# --------------------------------------------------------------------------- #
# Kernel: fused Linear(+folded BN) -> ReLU on one lane-dense packed tile.
# --------------------------------------------------------------------------- #
def _node_embedding_kernel(x_ref, w_ref, b_ref, o_ref):
    y = jnp.dot(x_ref[...], w_ref[...],
                preferred_element_type=jnp.float32,
                precision=jax.lax.Precision.HIGHEST)
    y = y + b_ref[...]                       # (1, pack*H) broadcast
    o_ref[...] = jnp.maximum(y, 0.0).astype(o_ref.dtype)


# --------------------------------------------------------------------------- #
# One-time parameter preparation (hoist out of the per-call path).
# --------------------------------------------------------------------------- #
class NodeEmbeddingParams(NamedTuple):
    w_bd: jax.Array        # (pack*F, pack*H) block-diagonal folded weight
    b_bd: jax.Array        # (1, pack*H) folded shift
    pack: int
    num_features: int
    hidden_dim: int


def prepare_node_embedding_params(w_t, bias, gamma, beta, running_mean,
                                  running_var, *, pack=None):
    """Fold BN(eval)+bias into W'/b' and build the block-diagonal packed weight."""
    F, H = w_t.shape
    base = 128 // math.gcd(H, 128)             # minimal lane-dense pack
    if pack is None:
        pack = base * max(1, _PACK_TARGET // base)
    assert pack % base == 0, "pack must keep pack*H a multiple of 128 lanes"

    scale = gamma / jnp.sqrt(running_var + BN_EPS)           # (H,)
    w_fold = w_t * scale[None, :]                            # (F, H)
    b_fold = (bias - running_mean) * scale + beta            # (H,)

    # Block-diagonal replication in a single broadcast-multiply (no per-block
    # dynamic-update-slice loop):  w_bd[j*F+f, k*H+h] = (j==k) * w_fold[f, h]
    eye = jnp.eye(pack, dtype=w_fold.dtype)
    w_bd = (eye[:, None, :, None] * w_fold[None, :, None, :]
            ).reshape(pack * F, pack * H)
    b_bd = jnp.tile(b_fold, pack).reshape(1, pack * H)
    return NodeEmbeddingParams(w_bd, b_bd, int(pack), int(F), int(H))


# --------------------------------------------------------------------------- #
# Apply (jitted so pad / reshape / trim fuse into one program with the kernel).
# --------------------------------------------------------------------------- #
@functools.partial(
    jax.jit,
    static_argnames=("pack", "hidden_dim", "nodes_per_tile", "out_dtype",
                     "trim_output"))
def _node_embedding_apply(x, w_bd, b_bd, *, pack, hidden_dim,
                          nodes_per_tile, out_dtype, trim_output):
    N, F = x.shape
    H = hidden_dim
    PF, PH = pack * F, pack * H
    odt = jnp.dtype(out_dtype) if out_dtype is not None else jnp.dtype(x.dtype)

    # ---- Minimal row padding: only up to a multiple of `pack` (plus a floor
    # of 8 packed rows for tiny inputs).  No padding to tile multiples -- the
    # last grid block is allowed to overhang; its OOB stores are dropped.
    n_rows = max(_round_up(N, pack), 8 * pack)
    if n_rows != N:
        x = jnp.pad(x, ((0, n_rows - N), (0, 0)))
    n_pack = n_rows // pack
    x_packed = x.reshape(n_pack, PF)           # free (metadata) reshape

    # ---- Tile / grid sizing.
    tile_rows = _round_up(max(8, nodes_per_tile // pack), 8)
    tile_rows = min(tile_rows, _round_up(n_pack, 8))
    # Keep >=2 grid steps when there is enough data so v7x megacore can shard.
    tile_rows = min(tile_rows, max(8, _round_up(pl.cdiv(n_pack, 2), 8)))
    # Clamp to the VMEM budget (input is lane-padded to >=128 lanes in VMEM).
    row_bytes = 2 * (_round_up(PF, 128) * x.dtype.itemsize + PH * odt.itemsize)
    tile_rows = min(tile_rows,
                    max(8, (_VMEM_TILE_BUDGET // row_bytes) // 8 * 8))
    grid = pl.cdiv(n_pack, tile_rows)

    vmem_limit = int(min(tile_rows * row_bytes        # double-buffered in+out
                         + 2 * PF * PH * 4            # resident weight
                         + (8 << 20),                 # headroom
                         48 << 20))

    out_packed = pl.pallas_call(
        _node_embedding_kernel,
        out_shape=jax.ShapeDtypeStruct((n_pack, PH), odt),
        grid_spec=pltpu.PrefetchScalarGridSpec(
            num_scalar_prefetch=0,
            grid=(grid,),
            in_specs=[
                pl.BlockSpec((tile_rows, PF), lambda i: (i, 0)),  # packed x
                pl.BlockSpec((PF, PH), lambda i: (0, 0)),         # W' (resident)
                pl.BlockSpec((1, PH), lambda i: (0, 0)),          # b' (resident)
            ],
            out_specs=pl.BlockSpec((tile_rows, PH), lambda i: (i, 0)),
        ),
        compiler_params=pltpu.CompilerParams(
            dimension_semantics=("parallel",),
            vmem_limit_bytes=vmem_limit,
        ),
    )(x_packed, w_bd, b_bd)

    out = out_packed.reshape(n_rows, H)        # free (metadata) reshape
    if trim_output and n_rows != N:
        # Pad rows hold relu(b') -- trimmed here.  Pass trim_output=False to
        # let a caller's jit fuse the trim with downstream consumers instead.
        out = out[:N]
    return out


def node_embedding(x, w_t=None, bias=None, gamma=None, beta=None,
                   running_mean=None, running_var=None, *, params=None,
                   nodes_per_tile=65536, out_dtype=None, trim_output=True):
    """Fused fc1 -> SyncBatchNorm(eval) -> ReLU (Dropout2d is identity in eval)."""
    if params is None:
        params = prepare_node_embedding_params(
            w_t, bias, gamma, beta, running_mean, running_var)
    return _node_embedding_apply(
        x, params.w_bd, params.b_bd,
        pack=params.pack, hidden_dim=params.hidden_dim,
        nodes_per_tile=nodes_per_tile, out_dtype=out_dtype,
        trim_output=trim_output)


def node_embedding_ref(x, w_t, bias, gamma, beta, running_mean, running_var):
    y = jnp.dot(x, w_t, precision=jax.lax.Precision.HIGHEST) + bias
    y = (y - running_mean) / jnp.sqrt(running_var + BN_EPS) * gamma + beta
    return jnp.maximum(y, 0.0)


if __name__ == "__main__":
    num_node_features = 4
    hidden_dim = 32

    key = jax.random.PRNGKey(0)
    k_x, k_w, k_b, k_g, k_be, k_m, k_v, k_x2, k_x3 = jax.random.split(key, 9)

    # fc1 parameters (PyTorch Linear init style: uniform(-1/sqrt(F), 1/sqrt(F)))
    bound = 1.0 / jnp.sqrt(jnp.float32(num_node_features))
    w = jax.random.uniform(k_w, (hidden_dim, num_node_features),
                           minval=-bound, maxval=bound, dtype=jnp.float32)
    bias = jax.random.uniform(k_b, (hidden_dim,),
                              minval=-bound, maxval=bound, dtype=jnp.float32)
    w_t = w.T  # (F, H) for direct x @ W

    # Non-trivial SyncBatchNorm running stats / affine params (exercise the fold).
    gamma = jax.random.uniform(k_g, (hidden_dim,), minval=0.5, maxval=1.5,
                               dtype=jnp.float32)
    beta = 0.1 * jax.random.normal(k_be, (hidden_dim,), dtype=jnp.float32)
    running_mean = 0.1 * jax.random.normal(k_m, (hidden_dim,), dtype=jnp.float32)
    running_var = jax.random.uniform(k_v, (hidden_dim,), minval=0.5, maxval=1.5,
                                     dtype=jnp.float32)

    # Prepare once, reuse across calls (hoisted out of the per-call path).
    params = prepare_node_embedding_params(w_t, bias, gamma, beta,
                                           running_mean, running_var)

    # Case 1: aligned bulk path -- N multiple of pack*8 -> no pad, no trim,
    # >=2 grid steps (exercises megacore sharding).
    n1 = 4096
    x1 = jax.random.normal(k_x, (n1, num_node_features), dtype=jnp.float32)
    ref1 = node_embedding_ref(x1, w_t, bias, gamma, beta,
                              running_mean, running_var)
    out1 = jax.block_until_ready(node_embedding(x1, params=params))
    assert out1.shape == (n1, hidden_dim)
    assert jnp.allclose(out1, ref1, atol=1e-4, rtol=1e-4), "mismatch (bulk)"

    # Case 2: tiny N (smaller than one packed sublane tile).
    n2 = 16
    x2 = jax.random.normal(k_x2, (n2, num_node_features), dtype=jnp.float32)
    ref2 = node_embedding_ref(x2, w_t, bias, gamma, beta,
                              running_mean, running_var)
    out2 = jax.block_until_ready(node_embedding(x2, params=params))
    assert out2.shape == (n2, hidden_dim)
    assert jnp.allclose(out2, ref2, atol=1e-4, rtol=1e-4), "mismatch (tiny)"

    # Case 3: ragged N with a small tile -> several grid steps and a partial
    # (overhanging) last block whose OOB stores are dropped.
    n3 = 1000
    x3 = jax.random.normal(k_x3, (n3, num_node_features), dtype=jnp.float32)
    ref3 = node_embedding_ref(x3, w_t, bias, gamma, beta,
                              running_mean, running_var)
    out3 = jax.block_until_ready(
        node_embedding(x3, params=params, nodes_per_tile=256))
    assert out3.shape == (n3, hidden_dim)
    assert jnp.allclose(out3, ref3, atol=1e-4, rtol=1e-4), "mismatch (ragged)"

    # Case 4: optional bf16 output (f32 accumulate, cast on store).
    out4 = jax.block_until_ready(
        node_embedding(x1, params=params, out_dtype=jnp.bfloat16))
    assert out4.dtype == jnp.bfloat16 and out4.shape == (n1, hidden_dim)
    assert jnp.allclose(out4.astype(jnp.float32), ref1, atol=5e-2, rtol=2e-2), \
        "mismatch (bf16)"

    print("KERNEL_OK")
</pallas_src>

<mosaic_0001>
module attributes {stable_mosaic.version = 11 : i64} {
  func.func @_node_embedding_kernel(%arg0: i32, %arg1: memref<128x64xf32, #tpu.memory_space<vmem>>, %arg2: memref<64x512xf32, #tpu.memory_space<vmem>>, %arg3: memref<1x512xf32, #tpu.memory_space<vmem>>, %arg4: memref<128x512xf32, #tpu.memory_space<vmem>>) attributes {dimension_semantics = [#tpu.dimension_semantics<parallel>], iteration_bounds = array<i64: 2>, scalar_prefetch = 0 : i64, scratch_operands = 0 : i64, tpu.core_type = #tpu.core_type<tc>, window_params = [{transform_indices = @transform_0, window_bounds = array<i64: 128, 64>}, {pipeline_mode = #tpu.pipeline_mode<synchronous>, transform_indices = @transform_1, window_bounds = array<i64: 64, 512>}, {pipeline_mode = #tpu.pipeline_mode<synchronous>, transform_indices = @transform_2, window_bounds = array<i64: 1, 512>}, {transform_indices = @transform_3, window_bounds = array<i64: 128, 512>}]} {
    %c0 = arith.constant 0 : index
    %c0_0 = arith.constant 0 : index
    %0 = vector.load %arg1[%c0, %c0_0] : memref<128x64xf32, #tpu.memory_space<vmem>>, vector<128x64xf32>
    %c0_1 = arith.constant 0 : index
    %c0_2 = arith.constant 0 : index
    %1 = vector.load %arg2[%c0_1, %c0_2] : memref<64x512xf32, #tpu.memory_space<vmem>>, vector<64x512xf32>
    %cst = arith.constant dense<0.000000e+00> : vector<128x512xf32>
    %2 = tpu.matmul %0, %1, %cst {dimension_numbers = #tpu.dot_dimension_numbers<[1], [0], [0], [1], [0, 0, 1, 1], [], []>, precision = #tpu.contract_precision<fp32>} : vector<128x64xf32>, vector<64x512xf32>, vector<128x512xf32> -> vector<128x512xf32>
    %c0_3 = arith.constant 0 : index
    %c0_4 = arith.constant 0 : index
    %3 = vector.load %arg3[%c0_3, %c0_4] : memref<1x512xf32, #tpu.memory_space<vmem>>, vector<1x512xf32>
    %4 = vector.broadcast %3 : vector<1x512xf32> to vector<128x512xf32>
    %5 = arith.addf %2, %4 : vector<128x512xf32>
    %cst_5 = arith.constant 0.000000e+00 : f32
    %6 = vector.broadcast %cst_5 : f32 to vector<128x512xf32>
    %7 = arith.maximumf %5, %6 : vector<128x512xf32>
    %c0_6 = arith.constant 0 : index
    %c0_7 = arith.constant 0 : index
    %8 = vector.load %arg4[%c0_6, %c0_7] : memref<128x512xf32, #tpu.memory_space<vmem>>, vector<128x512xf32>
    tpu.vector_store %arg4[%c0_6, %c0_7], %7 {strides = array<i32>} : memref<128x512xf32, #tpu.memory_space<vmem>>, vector<128x512xf32>,
    return
  }
  func.func @transform_0(%arg0: i32) -> (i32, i32) {
    %c0_i32 = arith.constant 0 : i32
    %c0_i32_0 = arith.constant 0 : i32
    return %arg0, %c0_i32 : i32, i32
  }
  func.func @transform_1(%arg0: i32) -> (i32, i32) {
    %c0_i32 = arith.constant 0 : i32
    %c0_i32_0 = arith.constant 0 : i32
    %c0_i32_1 = arith.constant 0 : i32
    return %c0_i32, %c0_i32_0 : i32, i32
  }
  func.func @transform_2(%arg0: i32) -> (i32, i32) {
    %c0_i32 = arith.constant 0 : i32
    %c0_i32_0 = arith.constant 0 : i32
    %c0_i32_1 = arith.constant 0 : i32
    return %c0_i32, %c0_i32_0 : i32, i32
  }
  func.func @transform_3(%arg0: i32) -> (i32, i32) {
    %c0_i32 = arith.constant 0 : i32
    %c0_i32_0 = arith.constant 0 : i32
    return %arg0, %c0_i32 : i32, i32
  }
}

</mosaic_0001>

<bundles_post_ra>
// kernel: _node_embedding_apply.1
= control target key start
LH: loop header
LB: loop body
LE: loop exit
PB: predicated region body
PF: predicated region fallthrough
CT: control target
= control target key end

     0   :  { %s3872_s12 = smov 0   ;;  %s5090_s0 = inlined_call_operand.vmem [shape: f32[256,64], index: 0, kind: input, shape index: {}]   ;;  %s5091_s1 = inlined_call_operand.vmem [shape: f32[64,512], index: 1, kind: input, shape index: {}]   ;;  %s5092_s2 = inlined_call_operand.vmem [shape: f32[1,512], index: 2, kind: input, shape index: {}]   ;;  %s5093_s3 = inlined_call_operand.vmem [shape: f32[256,512], index: 3, kind: output, shape index: {}]  }
   0x1 LB: > { %s3245_s13 = sadd.s32 4294967295, %s3849_s12   ;;  %p3249_p0 = scmp.ge.s32.totalorder %s3849_s12, 1  ;;  %s3849_s12 = sphi %s3872_s12, %s13_s12  }
   0x2   : > { %p138_p1 = scmp.lt.s32.totalorder %s3849_s12, 3 }
   0x4   : > { %p139_p2 = pnand %p3249_p0, %p138_p1 }
   0x6   : > { %142 = sbr.rel (%p139_p2) target bundleno = 646 (0x286), region = 32 }
   0xd   : > { %v193_v0 = vld [vmem:[%s5091_s1 + $0x8] sm:$0xff]  ;;  %v195_v2 = vld [vmem:[%s5091_s1 + $0x18] sm:$0xff]  ;;  %s3889_s20 = sshll.u32 %s3245_s13, 4  ;;  %v192_v7 = vld [vmem:[%s5091_s1] sm:$0xff]  ;;  %v5101_v9 = vmov 0.0   ;;  %vm246_vm0 = vcmask 523264  }
   0xe   : > { %v197_v1 = vld [vmem:[%s5091_s1 + $0x28] sm:$0xff]  ;;  %v295_v3 = vand.u32 4294901760, %v193_v0  ;;  %v199_v5 = vld [vmem:[%s5091_s1 + $0x38] sm:$0xff]  ;;  %v1677_v6 = vand.u32 4294901760, %v195_v2  ;;  %v196_v8 = vld [vmem:[%s5091_s1 + $0x20] sm:$0xff]  ;;  %375 = vmatprep.mubr.f32.mxu0 %v5101_v9  ;;  %1757 = vmatprep.mubr.f32.mxu1 %v5101_v9  ;;  %v297_v11 = vand.u32 4294901760, %v192_v7 }
   0xf   : > { %v299_v4 = vand.u32 4294901760, %v197_v1  ;;  %v1681_v10 = vand.u32 4294901760, %v199_v5  ;;  %v301_v12 = vand.u32 4294901760, %v196_v8  ;;  %v194_v13 = vld [vmem:[%s5091_s1 + $0x10] sm:$0xff]  ;;  %v201_v15 = vld [vmem:[%s5091_s1 + $0x48] sm:$0xff]  ;;  %v203_v18 = vld [vmem:[%s5091_s1 + $0x58] sm:$0xff] }
  0x10   : > { %v198_v14 = vld [vmem:[%s5091_s1 + $0x30] sm:$0xff]  ;;  %v205_v17 = vld [vmem:[%s5091_s1 + $0x68] sm:$0xff]  ;;  %v207_v19 = vld [vmem:[%s5091_s1 + $0x78] sm:$0xff]  ;;  %p164_p3 = scmp.lt.s32.totalorder %s3889_s20, 31  ;;  %v3931_v23 = vsub.f32 %v193_v0, %v295_v3  ;;  %v1679_v24 = vand.u32 4294901760, %v194_v13  ;;  %v303_v26 = vand.u32 4294901760, %v201_v15  ;;  %v3946_v34 = vsub.f32 %v195_v2, %v1677_v6 }
  0x11   : > { %v3911_v16 = vpack.c.bf16 %v299_v4, %v295_v3  ;;  %v3923_v20 = vpack.c.bf16 %v1681_v10, %v1677_v6  ;;  %v3925_v21 = vpack.c.bf16 %v301_v12, %v297_v11  ;;  %v200_v22 = vld [vmem:[%s5091_s1 + $0x40] sm:$0xff]  ;;  %v1683_v25 = vand.u32 4294901760, %v198_v14  ;;  %v202_v32 = vld [vmem:[%s5091_s1 + $0x50] sm:$0xff]  ;;  %v209_v38 = vld [vmem:[%s5091_s1 + $0x88] sm:$0xff] }
  0x12   : > { %v3933_v27 = vsub.f32 %v197_v1, %v299_v4  ;;  %v307_v28 = vand.u32 4294901760, %v205_v17  ;;  %v1685_v29 = vand.u32 4294901760, %v203_v18  ;;  %v1689_v30 = vand.u32 4294901760, %v207_v19  ;;  %v204_v31 = vld [vmem:[%s5091_s1 + $0x60] sm:$0xff]  ;;  %v206_v33 = vld [vmem:[%s5091_s1 + $0x70] sm:$0xff]  ;;  %v213_v39 = vld [vmem:[%s5091_s1 + $0xa8] sm:$0xff] }
  0x13   : > { %5238 = vst [vmem:[#allocation2_spill] sm:$0xff] %v3925_v21  ;;  %3259 = vmatprep.subr.bf16.mxu0 %v3911_v16  ;;  %3355 = vmatprep.subr.bf16.mxu1 %v3923_v20  ;;  %v3948_v35 = vsub.f32 %v199_v5, %v1681_v10  ;;  %v3950_v36 = vpack.c.bf16 %v1683_v25, %v1679_v24  ;;  %v305_v37 = vand.u32 4294901760, %v200_v22  ;;  %v211_v40 = vld [vmem:[%s5091_s1 + $0x98] sm:$0xff]  ;;  %s5392_s20 = smov (!%p164_p3, %s3889_s20), 31  ;;  %v309_v48 = vand.u32 4294901760, %v204_v31  ;;  %v208_v54 = vld [vmem:[%s5091_s1 + $0x80] sm:$0xff] }
  0x14   : > { %3261 = vmatpush1.bf16.msra.mxu0 %v3925_v21  ;;  %v3966_v41 = vsub.f32 %v192_v7, %v297_v11  ;;  %v3968_v42 = vsub.f32 %v196_v8, %v301_v12  ;;  %v3970_v43 = vpack.c.bf16 %v307_v28, %v303_v26  ;;  %v3972_v44 = vpack.c.bf16 %v1689_v30, %v1685_v29  ;;  %v215_v45 = vld [vmem:[%s5091_s1 + $0xb8] sm:$0xff]  ;;  %v212_v55 = vld [vmem:[%s5091_s1 + $0xa0] sm:$0xff]  ;;  %v210_v60 = vld [vmem:[%s5091_s1 + $0x90] sm:$0xff]  ;;  %s3251_s14 = sshll.u32 %s5392_s20, 3  ;;  %s3257_s8 = sshll.u32 %s5392_s20, 5 }
  0x15   : > { %5239 = vst [vmem:[#allocation3_spill] sm:$0xff] %v3950_v36  ;;  %3357 = vmatpush1.bf16.msra.mxu1 %v3950_v36  ;;  %v3978_v46 = vsub.f32 %v194_v13, %v1679_v24  ;;  %v3980_v47 = vsub.f32 %v198_v14, %v1683_v25  ;;  %v1687_v49 = vand.u32 4294901760, %v202_v32  ;;  %v1691_v50 = vand.u32 4294901760, %v206_v33  ;;  %v214_v61 = vld [vmem:[%s5091_s1 + $0xb0] sm:$0xff]  ;;  %v217_v62 = vld [vmem:[%s5091_s1 + $0xc8] sm:$0xff]  ;;  %v219_v4 = vld [vmem:[%s5091_s1 + $0xd8] sm:$0xff]  ;;  %s4039_s24 = scalar_lea.vmem %s5090_s0, %s3251_s14  ;;  %s4959_s11 = scalar_lea.vmem %s5093_s3, %s3257_s8 }
  0x16   : > { %5240 = vst [vmem:[#allocation4_spill] sm:$0xff] %v3970_v43  ;;  %5241 = vst [vmem:[#allocation5_spill] sm:$0xff] %v3972_v44  ;;  %3263 = vmatprep.subr.bf16.mxu0 %v3970_v43  ;;  %3359 = vmatprep.subr.bf16.mxu1 %v3972_v44  ;;  %v311_v51 = vand.u32 4294901760, %v209_v38  ;;  %v315_v52 = vand.u32 4294901760, %v213_v39  ;;  %v1693_v53 = vand.u32 4294901760, %v211_v40  ;;  %v3990_v56 = vsub.f32 %v201_v15, %v303_v26  ;;  %v221_v3 = vld [vmem:[%s5091_s1 + $0xe8] sm:$0xff] }
  0x17   : > { %v3992_v57 = vsub.f32 %v205_v17, %v307_v28  ;;  %v3994_v58 = vpack.c.bf16 %v309_v48, %v305_v37  ;;  %v1697_v59 = vand.u32 4294901760, %v215_v45  ;;  %v4006_v63 = vsub.f32 %v203_v18, %v1685_v29  ;;  %v4023_v5 = vld [vmem:[%s5091_s1 + $0xf8] sm:$0xff]  ;;  %v4059_v29 = vld [vmem:[%s5091_s1 + $0xe0] sm:$0xff] }
  0x18   : > { %v4008_v0 = vsub.f32 %v207_v19, %v1689_v30  ;;  %v4010_v1 = vpack.c.bf16 %v1691_v50, %v1687_v49  ;;  %v4012_v2 = vpack.c.bf16 %v315_v52, %v311_v51  ;;  %v4026_v6 = vsub.f32 %v200_v22, %v305_v37  ;;  %v4046_v22 = vld [vmem:[%s5091_s1 + $0xc0] sm:$0xff]  ;;  %v4064_v30 = vld [vmem:[%s5091_s1 + $0xd0] sm:$0xff]  ;;  %v183_v43 = vld [vmem:[%s4039_s24 + $0x38] sm:$0xff] }
  0x19   : > { %5242 = vst [vmem:[#allocation6_spill] sm:$0xff] %v3994_v58  ;;  %3265 = vmatpush1.bf16.msra.mxu0 %v3994_v58  ;;  %v4028_v7 = vsub.f32 %v204_v31, %v309_v48  ;;  %v4030_v8 = vsub.f32 %v202_v32, %v1687_v49  ;;  %v4032_v10 = vpack.c.bf16 %v1697_v59, %v1693_v53  ;;  %v313_v11 = vand.u32 4294901760, %v208_v54  ;;  %v4069_v31 = vld [vmem:[%s5091_s1 + $0xf0] sm:$0xff]  ;;  %v176_v48 = vld [vmem:[%s4039_s24] sm:$0xff] }
  0x1a   : > { %5243 = vst [vmem:[#allocation7_spill] sm:$0xff] %v4010_v1  ;;  %5244 = vst [vmem:[#allocation8_spill] sm:$0xff] %v4012_v2  ;;  %3361 = vmatpush1.bf16.msra.mxu1 %v4010_v1  ;;  %3267 = vmatprep.subr.bf16.mxu0 %v4012_v2  ;;  %v317_v12 = vand.u32 4294901760, %v212_v55  ;;  %v1695_v13 = vand.u32 4294901760, %v210_v60  ;;  %v1699_v14 = vand.u32 4294901760, %v214_v61  ;;  %v319_v15 = vand.u32 4294901760, %v217_v62 }
  0x1b   : > { %5245 = vst [vmem:[#allocation9_spill] sm:$0xff] %v4032_v10  ;;  %3363 = vmatprep.subr.bf16.mxu1 %v4032_v10  ;;  %v323_v17 = vand.u32 4294901760, %v221_v3  ;;  %v1701_v18 = vand.u32 4294901760, %v219_v4  ;;  %v5100_v19 = vand.u32 4294901760, %v4023_v5  ;;  %v4048_v24 = vsub.f32 %v206_v33, %v1691_v50  ;;  %v184_v36 = vld [vmem:[%s4039_s24 + $0x40] sm:$0xff] }
  0x1c   : > { %v4050_v25 = vsub.f32 %v209_v38, %v311_v51  ;;  %v4052_v26 = vpack.c.bf16 %v317_v12, %v313_v11  ;;  %v4054_v28 = vpack.c.bf16 %v1699_v14, %v1695_v13  ;;  %v4071_v32 = vsub.f32 %v213_v39, %v315_v52 }
  0x1d   : > { %v4073_v33 = vsub.f32 %v211_v40, %v1693_v53  ;;  %v4075_v37 = vsub.f32 %v215_v45, %v1697_v59  ;;  %v4077_v38 = vpack.c.bf16 %v323_v17, %v319_v15  ;;  %v4081_v49 = vsub.f32 %v208_v54, %v313_v11 }
  0x1e   : > { %5246 = vst [vmem:[#allocation10_spill] sm:$0xff] %v4052_v26  ;;  %5247 = vst [vmem:[#allocation11_spill] sm:$0xff] %v4054_v28  ;;  %3269 = vmatpush1.bf16.msra.mxu0 %v4052_v26  ;;  %v4083_v50 = vsub.f32 %v212_v55, %v317_v12  ;;  %3365 = vmatpush1.bf16.msra.mxu1 %v4054_v28  ;;  %v4088_v51 = vpack.c.bf16 %v5100_v19, %v1701_v18  ;;  %v5099_v39 = vand.u32 4294901760, %v4046_v22  ;;  %v179_v28 = vld [vmem:[%s4039_s24 + $0x18] sm:$0xff] }
  0x1f   : > { %5248 = vst [vmem:[#allocation12_spill] sm:$0xff] %v4077_v38  ;;  %v4091_v40 = vsub.f32 %v210_v60, %v1695_v13  ;;  %3271 = vmatprep.subr.bf16.mxu0 %v4077_v38  ;;  %v5098_v45 = vand.u32 4294901760, %v4059_v29  ;;  %v5096_v52 = vand.u32 4294901760, %v4064_v30  ;;  %v5095_v53 = vand.u32 4294901760, %v4069_v31 }
  0x20   : > { %5249 = vst [vmem:[#allocation13_spill] sm:$0xff] %v4088_v51  ;;  %v4097_v54 = vsub.f32 %v214_v61, %v1699_v14  ;;  %3367 = vmatprep.subr.bf16.mxu1 %v4088_v51  ;;  %v248_v55 = vsel %vm246_vm0, %v176_v48, 0  ;;  %v5094_v59 = vand.u32 4294901760, %v3931_v23  ;;  %v5097_v11 = vand.u32 4294901760, %v3933_v27 }
  0x21   : > { %v4103_v60 = vsub.f32 %v217_v62, %v319_v15  ;;  %v4105_v12 = vsub.f32 %v221_v3, %v323_v17  ;;  %v4111_v13 = vpack.c.bf16 %v5098_v45, %v5099_v39  ;;  %v4117_v61 = vpack.c.bf16 %v5095_v53, %v5096_v52 }
  0x22   : > { %v4119_v14 = vsub.f32 %v219_v4, %v1701_v18  ;;  %v4121_v48 = vand.u32 4294901760, %v248_v55  ;;  %v555_v62 = vsub.f32 %v3931_v23, %v5094_v59  ;;  %v567_v3 = vsub.f32 %v3933_v27, %v5097_v11 }
  0x23   : > { %5250 = vst [vmem:[#allocation14_spill] sm:$0xff] %v4111_v13  ;;  %5251 = vst [vmem:[#allocation15_spill] sm:$0xff] %v4117_v61  ;;  %3273 = vmatpush1.bf16.msra.mxu0 %v4111_v13  ;;  %3369 = vmatpush1.bf16.msra.mxu1 %v4117_v61  ;;  %v5103_v15 = vand.u32 4294901760, %v3946_v34  ;;  %v5104_v4 = vand.u32 4294901760, %v3948_v35  ;;  %v5111_v17 = vand.u32 4294901760, %v3966_v41  ;;  %v5116_v18 = vand.u32 4294901760, %v3968_v42 }
  0x24   : > { %v4136_v59 = vsub.f32 %v248_v55, %v4121_v48  ;;  %v556_v53 = vand.u32 4294901760, %v555_v62  ;;  %v568_v52 = vand.u32 4294901760, %v567_v3  ;;  %v5119_v11 = vand.u32 4294901760, %v3978_v46  ;;  %v177_v62 = vld [vmem:[%s4039_s24 + $0x8] sm:$0xff]  ;;  %v178_v61 = vld [vmem:[%s4039_s24 + $0x10] sm:$0xff] }
  0x25   : > { %v1937_v45 = vsub.f32 %v3946_v34, %v5103_v15  ;;  %v1949_v39 = vsub.f32 %v3948_v35, %v5104_v4  ;;  %v561_v19 = vsub.f32 %v3966_v41, %v5111_v17  ;;  %v573_v55 = vsub.f32 %v3968_v42, %v5116_v18 }
  0x26   : > { %5252 = vst [vmem:[#allocation16_spill] sm:$0xff] %v4136_v59  ;;  %v4153_v3 = vand.u32 4294901760, %v4136_v59  ;;  %v3274_v9 = vpack.c.bf16 %v568_v52, %v556_v53  ;;  %v1943_v15 = vsub.f32 %v3978_v46, %v5119_v11  ;;  %v5126_v4 = vand.u32 4294901760, %v3980_v47  ;;  %v180_v11 = vld [vmem:[%s4039_s24 + $0x20] sm:$0xff] }
  0x27   : > { %v1938_v13 = vand.u32 4294901760, %v1937_v45  ;;  %v1950_v51 = vand.u32 4294901760, %v1949_v39  ;;  %v562_v17 = vand.u32 4294901760, %v561_v19  ;;  %v574_v38 = vand.u32 4294901760, %v573_v55 }
  0x28   : > { %5253 = vst [vmem:[#allocation17_spill] sm:$0xff] %v4153_v3  ;;  %v379_v18 = vsub.f32 %v4136_v59, %v4153_v3  ;;  %3275 = vmatprep.subr.bf16.mxu0 %v3274_v9  ;;  %v1944_v26 = vand.u32 4294901760, %v1943_v15  ;;  %v1955_v52 = vsub.f32 %v3980_v47, %v5126_v4  ;;  %v251_v53 = vsel %vm246_vm0, %v177_v62, 0 }
  0x29   : > { %v3370_v10 = vpack.c.bf16 %v1950_v51, %v1938_v13  ;;  %v3276_v2 = vpack.c.bf16 %v574_v38, %v562_v17  ;;  %v4168_v1 = vand.u32 4294901760, %v251_v53  ;;  %v254_v19 = vsel %vm246_vm0, %v178_v61, 0 }
  0x2a   : > { %v380_v39 = vand.u32 4294901760, %v379_v18  ;;  %v1956_v45 = vand.u32 4294901760, %v1955_v52  ;;  %v4171_v55 = vand.u32 4294901760, %v254_v19  ;;  %v257_v9 = vsel %vm246_vm0, %v179_v28, 0 }
  0x2b   : > { %3371 = vmatprep.subr.bf16.mxu1 %v3370_v10  ;;  %v4175_v15 = vsub.f32 %v251_v53, %v4168_v1  ;;  %v4177_v4 = vand.u32 4294901760, %v257_v9  ;;  %v260_v62 = vsel %vm246_vm0, %v180_v11, 0  ;;  %v5127_v38 = vand.u32 4294901760, %v3990_v56 }
  0x2c   : > { %5254 = vst [vmem:[#allocation18_spill] sm:$0xff] %v4171_v55  ;;  %381 = vmatmul.mubr.f32.vlgmr.msra.gmra.mrb[0].mxu0 %v380_v39  ;;  %1763 = vmatmul.mubr.f32.vlgmr.msra.gmra.mrb[0].mxu1 %v380_v39  ;;  %v3372_v51 = vpack.c.bf16 %v1956_v45, %v1944_v26  ;;  %v4182_v13 = vsub.f32 %v254_v19, %v4171_v55  ;;  %v4184_v61 = vand.u32 4294901760, %v260_v62  ;;  %v5128_v28 = vand.u32 4294901760, %v3992_v57 }
  0x2d   : > { %5255 = vst [vmem:[#allocation19_spill] sm:$0xff] %v4175_v15  ;;  %5256 = vst [vmem:[#allocation20_spill] sm:$0xff] %v4177_v4  ;;  %3277 = vmatpush1.bf16.msra.mxu0 %v3276_v2  ;;  %v5259_v10 = vmov 0.0   ;;  %v4189_v17 = vand.u32 4294901760, %v4175_v15  ;;  %v4192_v11 = vsub.f32 %v257_v9, %v4177_v4  ;;  %v579_v26 = vsub.f32 %v3990_v56, %v5127_v38 }
  0x2e   : > { %5257 = vst [vmem:[#allocation21_spill] sm:$0xff] %v4182_v13  ;;  %5258 = vst [vmem:[#allocation22_spill] sm:$0xff] %v4184_v61  ;;  %386 = vmatprep.mubr.f32.mxu0 %v5259_v10  ;;  %v5135_v18 = vand.u32 4294901760, %v4006_v63  ;;  %3373 = vmatpush1.bf16.msra.mxu1 %v3372_v51  ;;  %v4200_v52 = vand.u32 4294901760, %v4182_v13  ;;  %v4203_v2 = vsub.f32 %v260_v62, %v4184_v61  ;;  %v5144_v19 = vand.u32 4294901760, %v4008_v0 }
  0x2f   : > { %5260 = vst [vmem:[#allocation23_spill] sm:$0xff] %v4189_v17  ;;  %5261 = vst [vmem:[#allocation24_spill] sm:$0xff] %v4192_v11  ;;  %1768 = vmatprep.mubr.f32.mxu1 %v5259_v10  ;;  %v591_v53 = vsub.f32 %v3992_v57, %v5128_v28  ;;  %v390_v39 = vsub.f32 %v4175_v15, %v4189_v17  ;;  %v4212_v45 = vand.u32 4294901760, %v4192_v11  ;;  %v580_v9 = vand.u32 4294901760, %v579_v26  ;;  %v181_v15 = vld [vmem:[%s4039_s24 + $0x28] sm:$0xff] }
  0x30   : > { %5262 = vst [vmem:[#allocation25_spill] sm:$0xff] %v4200_v52  ;;  %5263 = vst [vmem:[#allocation26_spill] sm:$0xff] %v4203_v2  ;;  %v1961_v51 = vsub.f32 %v4006_v63, %v5135_v18  ;;  %v401_v62 = vsub.f32 %v4182_v13, %v4200_v52  ;;  %v4220_v38 = vand.u32 4294901760, %v4203_v2  ;;  %v1973_v3 = vsub.f32 %v4008_v0, %v5144_v19 }
  0x31   : > { %5264 = vst [vmem:[#allocation27_spill] sm:$0xff] %v4212_v45  ;;  %v592_v28 = vand.u32 4294901760, %v591_v53  ;;  %v391_v17 = vand.u32 4294901760, %v390_v39  ;;  %v412_v26 = vsub.f32 %v4192_v11, %v4212_v45  ;;  %v5153_v18 = vand.u32 4294901760, %v4026_v6  ;;  %v182_v11 = vld [vmem:[%s4039_s24 + $0x30] sm:$0xff] }
  0x32   : > { %5265 = vst [vmem:[#allocation28_spill] sm:$0xff] %v4220_v38  ;;  %v1962_v58 = vand.u32 4294901760, %v1961_v51  ;;  %v402_v52 = vand.u32 4294901760, %v401_v62  ;;  %v423_v13 = vsub.f32 %v4203_v2, %v4220_v38  ;;  %v1974_v44 = vand.u32 4294901760, %v1973_v3 }
  0x33   : > { %v3278_v53 = vpack.c.bf16 %v592_v28, %v580_v9  ;;  %392 = vmatmul.mubr.f32.gmra.mrb[2].mxu0 %v391_v17  ;;  %1774 = vmatmul.mubr.f32.gmra.mrb[2].mxu1 %v391_v17  ;;  %v413_v19 = vand.u32 4294901760, %v412_v26  ;;  %v585_v39 = vsub.f32 %v4026_v6, %v5153_v18  ;;  %v5156_v45 = vand.u32 4294901760, %v4028_v7 }
  0x34   : > { %v5157_v51 = vand.u32 4294901760, %v4030_v8  ;;  %397 = vmatprep.mubr.f32.mxu0 %v5259_v10  ;;  %1779 = vmatprep.mubr.f32.mxu1 %v5259_v10  ;;  %v424_v28 = vand.u32 4294901760, %v423_v13  ;;  %v3374_v3 = vpack.c.bf16 %v1974_v44, %v1962_v58  ;;  %v5158_v17 = vand.u32 4294901760, %v4048_v24 }
  0x35   : > { %v263_v9 = vsel %vm246_vm0, %v181_v15, 0  ;;  %3279 = vmatprep.subr.bf16.mxu0 %v3278_v53  ;;  %v586_v62 = vand.u32 4294901760, %v585_v39  ;;  %v597_v26 = vsub.f32 %v4028_v7, %v5156_v45  ;;  %v266_v58 = vsel %vm246_vm0, %v182_v11, 0 }
  0x36   : > { %v1967_v18 = vsub.f32 %v4030_v8, %v5157_v51  ;;  %v4249_v38 = vand.u32 4294901760, %v263_v9  ;;  %3375 = vmatprep.subr.bf16.mxu1 %v3374_v3  ;;  %v1979_v44 = vsub.f32 %v4048_v24, %v5158_v17  ;;  %v269_v15 = vsel %vm246_vm0, %v183_v43, 0 }
  0x37   : > { %v272_v13 = vsel %vm246_vm0, %v184_v36, 0  ;;  %403 = vmatmul.mubr.f32.gmra.mrb[4].mxu0 %v402_v52  ;;  %1785 = vmatmul.mubr.f32.gmra.mrb[4].mxu1 %v402_v52  ;;  %v598_v53 = vand.u32 4294901760, %v597_v26  ;;  %v4260_v51 = vand.u32 4294901760, %v266_v58  ;;  %v4264_v17 = vand.u32 4294901760, %v269_v15 }
  0x38   : > { %5266 = vst [vmem:[#allocation29_spill] sm:$0xff] %v4249_v38  ;;  %v1968_v39 = vand.u32 4294901760, %v1967_v18  ;;  %v4258_v45 = vsub.f32 %v263_v9, %v4249_v38  ;;  %408 = vmatprep.mubr.f32.mxu0 %v5259_v10  ;;  %1790 = vmatprep.mubr.f32.mxu1 %v5259_v10  ;;  %v1980_v3 = vand.u32 4294901760, %v1979_v44  ;;  %v4266_v11 = vand.u32 4294901760, %v272_v13 }
  0x39   : > { %5268 = vst [vmem:[#allocation31_spill] sm:$0xff] %v4260_v51  ;;  %5269 = vst [vmem:[#allocation32_spill] sm:$0xff] %v4264_v17  ;;  %v5163_v36 = vand.u32 4294901760, %v4050_v25  ;;  %v3280_v43 = vpack.c.bf16 %v598_v53, %v586_v62  ;;  %v4273_v18 = vsub.f32 %v266_v58, %v4260_v51  ;;  %v5164_v9 = vand.u32 4294901760, %v4071_v32 }
  0x3a   : > { %5267 = vst [vmem:[#allocation30_spill] sm:$0xff] %v4258_v45  ;;  %5270 = vst [vmem:[#allocation33_spill] sm:$0xff] %v4266_v11  ;;  %v4270_v52 = vand.u32 4294901760, %v4258_v45  ;;  %v3376_v26 = vpack.c.bf16 %v1980_v3, %v1968_v39  ;;  %v4277_v2 = vsub.f32 %v269_v15, %v4264_v17  ;;  %v4280_v44 = vsub.f32 %v272_v13, %v4266_v11  ;;  %v188_v17 = vld [vmem:[%s4039_s24 + $0x60] sm:$0xff] }
  0x3b   : > { %5272 = vst [vmem:[#allocation35_spill] sm:$0xff] %v4273_v18  ;;  %v603_v21 = vsub.f32 %v4050_v25, %v5163_v36  ;;  %414 = vmatmul.mubr.f32.gmra.mrb[6].mxu0 %v413_v19  ;;  %1796 = vmatmul.mubr.f32.gmra.mrb[6].mxu1 %v413_v19  ;;  %v4288_v58 = vand.u32 4294901760, %v4273_v18  ;;  %v615_v15 = vsub.f32 %v4071_v32, %v5164_v9  ;;  %v5276_v13 = vand.u32 4294901760, %v4023_v5 }
  0x3c   : > { %5271 = vst [vmem:[#allocation34_spill] sm:$0xff] %v4270_v52  ;;  %5273 = vst [vmem:[#allocation36_spill] sm:$0xff] %v4277_v2  ;;  %v434_v62 = vsub.f32 %v4258_v45, %v4270_v52  ;;  %419 = vmatprep.mubr.f32.mxu0 %v5259_v10  ;;  %1801 = vmatprep.mubr.f32.mxu1 %v5259_v10  ;;  %v4302_v19 = vand.u32 4294901760, %v4277_v2  ;;  %v5278_v9 = vand.u32 4294901760, %v4046_v22  ;;  %v5279_v52 = vand.u32 4294901760, %v4073_v33 }
  0x3d   : > { %5274 = vst [vmem:[#allocation37_spill] sm:$0xff] %v4280_v44  ;;  %5275 = vst [vmem:[#allocation38_spill] sm:$0xff] %v4288_v58  ;;  %v4297_v39 = vsub.f32 %v4023_v5, %v5276_v13  ;;  %v604_v3 = vand.u32 4294901760, %v603_v21  ;;  %3281 = vmatpush1.bf16.msra.mxu0 %v3280_v43  ;;  %3377 = vmatpush1.bf16.msra.mxu1 %v3376_v26  ;;  %v445_v5 = vsub.f32 %v4273_v18, %v4288_v58  ;;  %v185_v26 = vld [vmem:[%s4039_s24 + $0x48] sm:$0xff] }
  0x3e   : > { %5277 = vst [vmem:[#allocation39_spill] sm:$0xff] %v4302_v19  ;;  %v4308_v53 = vsub.f32 %v4046_v22, %v5278_v9  ;;  %v616_v13 = vand.u32 4294901760, %v615_v15  ;;  %v1985_v45 = vsub.f32 %v4073_v33, %v5279_v52  ;;  %v5280_v21 = vand.u32 4294901760, %v4059_v29 }
  0x3f   : > { %v4321_v59 = vand.u32 4294901760, %v4280_v44  ;;  %v5282_v22 = vand.u32 4294901760, %v4075_v37  ;;  %425 = vmatmul.mubr.f32.gmra.mrb[8].mxu0 %v424_v28  ;;  %1807 = vmatmul.mubr.f32.gmra.mrb[8].mxu1 %v424_v28  ;;  %v435_v15 = vand.u32 4294901760, %v434_v62  ;;  %v446_v18 = vand.u32 4294901760, %v445_v5  ;;  %v187_v5 = vld [vmem:[%s4039_s24 + $0x58] sm:$0xff] }
  0x40   : > { %v4318_v36 = vsub.f32 %v4059_v29, %v5280_v21  ;;  %v3282_v52 = vpack.c.bf16 %v616_v13, %v604_v3  ;;  %v1986_v58 = vand.u32 4294901760, %v1985_v45  ;;  %v5185_v29 = vand.u32 4294901760, %v4083_v50  ;;  %v186_v21 = vld [vmem:[%s4039_s24 + $0x50] sm:$0xff]  ;;  %430 = vmatprep.mubr.f32.mxu0 %v5259_v10  ;;  %1812 = vmatprep.mubr.f32.mxu1 %v5259_v10 }
  0x41   : > { %5281 = vst [vmem:[#allocation40_spill] sm:$0xff] %v4321_v59  ;;  %v1997_v43 = vsub.f32 %v4075_v37, %v5282_v22  ;;  %v456_v22 = vsub.f32 %v4277_v2, %v4302_v19  ;;  %v5283_v11 = vand.u32 4294901760, %v4081_v49  ;;  %v5186_v62 = vand.u32 4294901760, %v4091_v40 }
  0x42   : > { %3283 = vmatprep.subr.bf16.mxu0 %v3282_v52  ;;  %v621_v45 = vsub.f32 %v4083_v50, %v5185_v29  ;;  %v5187_v3 = vand.u32 4294901760, %v4097_v54  ;;  %v275_v13 = vsel %vm246_vm0, %v185_v26, 0  ;;  %v278_v2 = vsel %vm246_vm0, %v186_v21, 0 }
  0x43   : > { %v1998_v9 = vand.u32 4294901760, %v1997_v43  ;;  %v609_v28 = vsub.f32 %v4081_v49, %v5283_v11  ;;  %v4345_v43 = vand.u32 4294901760, %v275_v13  ;;  %436 = vmatmul.mubr.f32.gmra.mrb[10].mxu0 %v435_v15  ;;  %1818 = vmatmul.mubr.f32.gmra.mrb[10].mxu1 %v435_v15  ;;  %v1991_v52 = vsub.f32 %v4091_v40, %v5186_v62 }
  0x44   : > { %v622_v11 = vand.u32 4294901760, %v621_v45  ;;  %v2003_v29 = vsub.f32 %v4097_v54, %v5187_v3  ;;  %v4354_v26 = vand.u32 4294901760, %v278_v2  ;;  %441 = vmatprep.mubr.f32.mxu0 %v5259_v10  ;;  %1823 = vmatprep.mubr.f32.mxu1 %v5259_v10  ;;  %v284_v15 = vsel %vm246_vm0, %v188_v17, 0 }
  0x45   : > { %v3378_v51 = vpack.c.bf16 %v1998_v9, %v1986_v58  ;;  %v610_v19 = vand.u32 4294901760, %v609_v28  ;;  %5284 = vst [vmem:[#allocation41_spill] sm:$0xff] %v4345_v43  ;;  %v4359_v58 = vsub.f32 %v275_v13, %v4345_v43  ;;  %v281_v9 = vsel %vm246_vm0, %v187_v5, 0 }
  0x46   : > { %5285 = vst [vmem:[#allocation42_spill] sm:$0xff] %v4354_v26  ;;  %v5196_v21 = vand.u32 4294901760, %v4103_v60  ;;  %v1992_v45 = vand.u32 4294901760, %v1991_v52  ;;  %v2004_v62 = vand.u32 4294901760, %v2003_v29  ;;  %v4365_v3 = vsub.f32 %v278_v2, %v4354_v26 }
  0x47   : > { %5286 = vst [vmem:[#allocation43_spill] sm:$0xff] %v4359_v58  ;;  %3379 = vmatprep.subr.bf16.mxu1 %v3378_v51  ;;  %v3284_v28 = vpack.c.bf16 %v622_v11, %v610_v19  ;;  %v467_v38 = vsub.f32 %v4280_v44, %v4321_v59  ;;  %v4370_v61 = vand.u32 4294901760, %v4359_v58  ;;  %v4372_v13 = vand.u32 4294901760, %v281_v9  ;;  %447 = vmatmul.mubr.f32.gmra.mrb[12].mxu0 %v446_v18  ;;  %v190_v44 = vld [vmem:[%s4039_s24 + $0x70] sm:$0xff] }
  0x48   : > { %5287 = vst [vmem:[#allocation44_spill] sm:$0xff] %v4365_v3  ;;  %v627_v17 = vsub.f32 %v4103_v60, %v5196_v21  ;;  %1829 = vmatmul.mubr.f32.gmra.mrb[12].mxu1 %v446_v18  ;;  %v457_v51 = vand.u32 4294901760, %v456_v22  ;;  %v3380_v19 = vpack.c.bf16 %v2004_v62, %v1992_v45  ;;  %v5194_v29 = vand.u32 4294901760, %v4105_v12  ;;  %452 = vmatprep.mubr.f32.mxu0 %v5259_v10 }
  0x49   : > { %5288 = vst [vmem:[#allocation45_spill] sm:$0xff] %v4370_v61  ;;  %5289 = vst [vmem:[#allocation46_spill] sm:$0xff] %v4372_v13  ;;  %v5195_v2 = vand.u32 4294901760, %v4119_v14  ;;  %v5290_v5 = vand.u32 4294901760, %v4064_v30  ;;  %v5291_v52 = vand.u32 4294901760, %v4069_v31  ;;  %1834 = vmatprep.mubr.f32.mxu1 %v5259_v10  ;;  %v4392_v18 = vand.u32 4294901760, %v4365_v3  ;;  %3285 = vmatpush1.bf16.msra.mxu0 %v3284_v28 }
  0x4a   : > { %v4394_v22 = vand.u32 4294901760, %v284_v15  ;;  %3381 = vmatpush1.bf16.msra.mxu1 %v3380_v19  ;;  %v628_v62 = vand.u32 4294901760, %v627_v17  ;;  %v5199_v45 = vand.u32 4294901760, %v4297_v39  ;;  %v5210_v28 = vand.u32 4294901760, %v4308_v53 }
  0x4b   : > { %v4382_v11 = vsub.f32 %v4064_v30, %v5290_v5  ;;  %v4387_v59 = vsub.f32 %v4069_v31, %v5291_v52  ;;  %5292 = vst [vmem:[#allocation47_spill] sm:$0xff] %v4392_v18  ;;  %v639_v30 = vsub.f32 %v4105_v12, %v5194_v29  ;;  %v2009_v31 = vsub.f32 %v4119_v14, %v5195_v2 }
  0x4c   : > { %5293 = vst [vmem:[#allocation48_spill] sm:$0xff] %v4394_v22  ;;  %v478_v5 = vsub.f32 %v4359_v58, %v4370_v61  ;;  %v4406_v52 = vsub.f32 %v281_v9, %v4372_v13  ;;  %458 = vmatmul.mubr.f32.gmra.mrb[14].mxu0 %v457_v51  ;;  %1840 = vmatmul.mubr.f32.gmra.mrb[14].mxu1 %v457_v51  ;;  %v468_v17 = vand.u32 4294901760, %v467_v38  ;;  %v5212_v51 = vand.u32 4294901760, %v4318_v36 }
  0x4d   : > { %v640_v19 = vand.u32 4294901760, %v639_v30  ;;  %v2010_v29 = vand.u32 4294901760, %v2009_v31  ;;  %v2021_v2 = vsub.f32 %v4297_v39, %v5199_v45  ;;  %463 = vmatprep.mubr.f32.mxu0 %v5259_v10  ;;  %1845 = vmatprep.mubr.f32.mxu1 %v5259_v10  ;;  %v489_v9 = vsub.f32 %v4365_v3, %v4392_v18  ;;  %v189_v30 = vld [vmem:[%s4039_s24 + $0x68] sm:$0xff] }
  0x4e   : > { %v4417_v21 = vsub.f32 %v284_v15, %v4394_v22  ;;  %v633_v38 = vsub.f32 %v4308_v53, %v5210_v28  ;;  %v5211_v45 = vand.u32 4294901760, %v4382_v11  ;;  %v5213_v58 = vand.u32 4294901760, %v4387_v59 }
  0x4f   : > { %v3286_v31 = vpack.c.bf16 %v640_v19, %v628_v62  ;;  %v2022_v61 = vand.u32 4294901760, %v2021_v2  ;;  %v479_v13 = vand.u32 4294901760, %v478_v5  ;;  %v4428_v18 = vand.u32 4294901760, %v4406_v52 }
  0x50   : > { %v634_v15 = vand.u32 4294901760, %v633_v38  ;;  %v645_v3 = vsub.f32 %v4318_v36, %v5212_v51  ;;  %469 = vmatmul.mubr.f32.gmra.mrb[16].mxu0 %v468_v17  ;;  %1851 = vmatmul.mubr.f32.gmra.mrb[16].mxu1 %v468_v17  ;;  %v2015_v2 = vsub.f32 %v4382_v11, %v5211_v45  ;;  %v2027_v62 = vsub.f32 %v4387_v59, %v5213_v58  ;;  %v191_v51 = vld [vmem:[%s4039_s24 + $0x78] sm:$0xff] }
  0x51   : > { %v3382_v28 = vpack.c.bf16 %v2022_v61, %v2010_v29  ;;  %v287_v5 = vsel %vm246_vm0, %v189_v30, 0  ;;  %474 = vmatprep.mubr.f32.mxu0 %v5259_v10  ;;  %1856 = vmatprep.mubr.f32.mxu1 %v5259_v10  ;;  %v290_v17 = vsel %vm246_vm0, %v190_v44, 0  ;;  %v4446_v61 = vand.u32 4294901760, %v4417_v21 }
  0x52   : > { %v646_v19 = vand.u32 4294901760, %v645_v3  ;;  %v4442_v38 = vand.u32 4294901760, %v287_v5  ;;  %3287 = vmatprep.subr.bf16.mxu0 %v3286_v31  ;;  %v2016_v29 = vand.u32 4294901760, %v2015_v2  ;;  %v2028_v45 = vand.u32 4294901760, %v2027_v62 }
  0x53   : > { %3383 = vmatprep.subr.bf16.mxu1 %v3382_v28  ;;  %v490_v58 = vand.u32 4294901760, %v489_v9  ;;  %v3290_v30 = vpack.c.bf16 %v3933_v27, %v3931_v23  ;;  %v3386_v3 = vpack.c.bf16 %v3948_v35, %v3946_v34  ;;  %v500_v44 = vsub.f32 %v4406_v52, %v4428_v18 }
  0x54   : > { %5294 = vst [vmem:[#allocation49_spill] sm:$0xff] %v4442_v38  ;;  %v3288_v22 = vpack.c.bf16 %v646_v19, %v634_v15  ;;  %480 = vmatmul.mubr.f32.gmra.mrb[18].mxu0 %v479_v13  ;;  %1862 = vmatmul.mubr.f32.gmra.mrb[18].mxu1 %v479_v13  ;;  %v3384_v26 = vpack.c.bf16 %v2028_v45, %v2016_v29  ;;  %v4458_v28 = vand.u32 4294901760, %v290_v17  ;;  %v293_v9 = vsel %vm246_vm0, %v191_v51, 0 }
  0x55   : > { %v4456_v31 = vsub.f32 %v287_v5, %v4442_v38  ;;  %485 = vmatprep.mubr.f32.mxu0 %v5259_v10  ;;  %1867 = vmatprep.mubr.f32.mxu1 %v5259_v10  ;;  %v3292_v15 = vpack.c.bf16 %v3968_v42, %v3966_v41  ;;  %v3388_v13 = vpack.c.bf16 %v3980_v47, %v3978_v46  ;;  %v501_v51 = vand.u32 4294901760, %v500_v44 }
  0x56   : > { %5295 = vst [vmem:[#allocation50_spill] sm:$0xff] %v4458_v28  ;;  %v3294_v45 = vpack.c.bf16 %v3992_v57, %v3990_v56  ;;  %3289 = vmatpush1.bf16.msra.mxu0 %v3288_v22  ;;  %3385 = vmatpush1.bf16.msra.mxu1 %v3384_v26  ;;  %v3390_v2 = vpack.c.bf16 %v4008_v0, %v4006_v63  ;;  %v4479_v29 = vand.u32 4294901760, %v293_v9 }
  0x57   : > { %v511_v62 = vsub.f32 %v4417_v21, %v4446_v61  ;;  %3291 = vmatprep.subr.bf16.mxu0 %v3290_v30  ;;  %3387 = vmatprep.subr.bf16.mxu1 %v3386_v3  ;;  %v4474_v5 = vand.u32 4294901760, %v4456_v31  ;;  %v4477_v19 = vsub.f32 %v290_v17, %v4458_v28 }
  0x58   : > { %491 = vmatmul.mubr.f32.gmra.mrb[20].mxu0 %v490_v58  ;;  %1873 = vmatmul.mubr.f32.gmra.mrb[20].mxu1 %v490_v58  ;;  %5296 = vst [vmem:[#allocation51_spill] sm:$0xff] %v4479_v29  ;;  %v4489_v30 = vsub.f32 %v293_v9, %v4479_v29 }
  0x59   : > { %496 = vmatprep.mubr.f32.mxu0 %v5259_v10  ;;  %1878 = vmatprep.mubr.f32.mxu1 %v5259_v10  ;;  %v512_v26 = vand.u32 4294901760, %v511_v62  ;;  %v522_v22 = vsub.f32 %v4456_v31, %v4474_v5  ;;  %v4486_v58 = vand.u32 4294901760, %v4477_v19 }
  0x5a   : > { %v4496_v44 = vand.u32 4294901760, %v4489_v30 }
  0x5b   : > { %v523_v17 = vand.u32 4294901760, %v522_v22  ;;  %v533_v3 = vsub.f32 %v4477_v19, %v4486_v58  ;;  %v3392_v22 = vpack.c.bf16 %v4048_v24, %v4030_v8 }
  0x5c   : > { %502 = vmatmul.mubr.f32.gmra.mrb[22].mxu0 %v501_v51  ;;  %1884 = vmatmul.mubr.f32.gmra.mrb[22].mxu1 %v501_v51  ;;  %v544_v62 = vsub.f32 %v4489_v30, %v4496_v44 }
  0x5d   : > { %507 = vmatprep.mubr.f32.mxu0 %v5259_v10  ;;  %1889 = vmatprep.mubr.f32.mxu1 %v5259_v10  ;;  %v534_v9 = vand.u32 4294901760, %v533_v3  ;;  %v3394_v3 = vpack.c.bf16 %v4075_v37, %v4073_v33 }
  0x5e   : > { %v545_v51 = vand.u32 4294901760, %v544_v62  ;;  %v3400_v62 = vpack.c.bf16 %v4387_v59, %v4382_v11 }
  0x60   : > { %513 = vmatmul.mubr.f32.gmra.mrb[24].mxu0 %v512_v26  ;;  %1895 = vmatmul.mubr.f32.gmra.mrb[24].mxu1 %v512_v26  ;;  %v3296_v26 = vpack.c.bf16 %v4028_v7, %v4026_v6 }
  0x61   : > { %518 = vmatprep.mubr.f32.mxu0 %v5259_v10  ;;  %1900 = vmatprep.mubr.f32.mxu1 %v5259_v10 }
  0x64   : > { %524 = vmatmul.mubr.f32.gmra.mrb[26].mxu0 %v523_v17  ;;  %1906 = vmatmul.mubr.f32.gmra.mrb[26].mxu1 %v523_v17  ;;  %v3298_v17 = vpack.c.bf16 %v4071_v32, %v4050_v25 }
  0x65   : > { %529 = vmatprep.mubr.f32.mxu0 %v5259_v10  ;;  %1911 = vmatprep.mubr.f32.mxu1 %v5259_v10 }
  0x68   : > { %535 = vmatmul.mubr.f32.gmra.mrb[28].mxu0 %v534_v9  ;;  %1917 = vmatmul.mubr.f32.gmra.mrb[28].mxu1 %v534_v9  ;;  %v3304_v9 = vpack.c.bf16 %v4318_v36, %v4308_v53 }
  0x69   : > { %540 = vmatprep.mubr.f32.mxu0 %v5259_v10  ;;  %1922 = vmatprep.mubr.f32.mxu1 %v5259_v10 }
  0x6c   : > { %546 = vmatmul.mubr.f32.gmra.mrb[30].mxu0 %v545_v51  ;;  %1928 = vmatmul.mubr.f32.gmra.mrb[30].mxu1 %v545_v51  ;;  %v5297_v51 = vld [vmem:[#allocation22_spill] sm:$0xff] }
  0x6d   : > { %696 = vmatprep.mubr.f32.mxu0 %v5259_v10  ;;  %2078 = vmatprep.mubr.f32.mxu1 %v5259_v10 }
  0x70   : > { %698 = vmatmul.mubr.f32.vlgmr.msra.gmra.mrb[0].mxu0 %v4121_v48  ;;  %2080 = vmatmul.mubr.f32.vlgmr.msra.gmra.mrb[0].mxu1 %v4121_v48 }
  0x71   : > { %3293 = vmatpush1.bf16.msra.mxu0 %v3292_v15  ;;  %3389 = vmatpush1.bf16.msra.mxu1 %v3388_v13  ;;  %v3300_v15 = vpack.c.bf16 %v4083_v50, %v4081_v49  ;;  %v3396_v13 = vpack.c.bf16 %v4097_v54, %v4091_v40 }
  0x72   : > { %703 = vmatprep.mubr.f32.mxu0 %v5259_v10  ;;  %2085 = vmatprep.mubr.f32.mxu1 %v5259_v10 }
  0x73   : > { %3295 = vmatprep.subr.bf16.mxu0 %v3294_v45  ;;  %3391 = vmatprep.subr.bf16.mxu1 %v3390_v2  ;;  %v3302_v45 = vpack.c.bf16 %v4105_v12, %v4103_v60  ;;  %v3398_v2 = vpack.c.bf16 %v4297_v39, %v4119_v14 }
  0x74   : > { %705 = vmatmul.mubr.f32.gmra.mrb[2].mxu0 %v4168_v1  ;;  %2087 = vmatmul.mubr.f32.gmra.mrb[2].mxu1 %v4168_v1 }
  0x75   : > { %710 = vmatprep.mubr.f32.mxu0 %v5259_v10  ;;  %2092 = vmatprep.mubr.f32.mxu1 %v5259_v10 }
  0x76   : > { %3297 = vmatpush1.bf16.msra.mxu0 %v3296_v26  ;;  %3393 = vmatpush1.bf16.msra.mxu1 %v3392_v22  ;;  %v5298_v26 = vld [vmem:[#allocation29_spill] sm:$0xff]  ;;  %v5299_v22 = vld [vmem:[#allocation31_spill] sm:$0xff] }
  0x77   : > { %3299 = vmatprep.subr.bf16.mxu0 %v3298_v17  ;;  %3395 = vmatprep.subr.bf16.mxu1 %v3394_v3  ;;  %v5300_v17 = vld [vmem:[#allocation32_spill] sm:$0xff]  ;;  %v5301_v3 = vld [vmem:[#allocation33_spill] sm:$0xff] }
  0x78   : > { %712 = vmatmul.mubr.f32.gmra.mrb[4].mxu0 %v4171_v55  ;;  %2094 = vmatmul.mubr.f32.gmra.mrb[4].mxu1 %v4171_v55  ;;  %v5322_v55 = vand.u32 4294901760, %v3946_v34  ;;  %v5329_v34 = vld [vmem:[#allocation35_spill] sm:$0xff] }
  0x79   : > { %717 = vmatprep.mubr.f32.mxu0 %v5259_v10  ;;  %2099 = vmatprep.mubr.f32.mxu1 %v5259_v10 }
  0x7a   : > { %3301 = vmatpush1.bf16.msra.mxu0 %v3300_v15  ;;  %3397 = vmatpush1.bf16.msra.mxu1 %v3396_v13  ;;  %v5302_v15 = vld [vmem:[#allocation42_spill] sm:$0xff] }
  0x7b   : > { %3303 = vmatprep.subr.bf16.mxu0 %v3302_v45  ;;  %3399 = vmatprep.subr.bf16.mxu1 %v3398_v2  ;;  %v5303_v13 = vld [vmem:[#allocation46_spill] sm:$0xff]  ;;  %v5304_v45 = vld [vmem:[#allocation48_spill] sm:$0xff] }
  0x7c   : > { %719 = vmatmul.mubr.f32.gmra.mrb[6].mxu0 %v4177_v4  ;;  %2101 = vmatmul.mubr.f32.gmra.mrb[6].mxu1 %v4177_v4  ;;  %v5305_v2 = vld [vmem:[#allocation16_spill] sm:$0xff] }
  0x7d   : > { %724 = vmatprep.mubr.f32.mxu0 %v5259_v10  ;;  %2106 = vmatprep.mubr.f32.mxu1 %v5259_v10 }
  0x7e   : > { %3305 = vmatpush1.bf16.msra.mxu0 %v3304_v9  ;;  %3401 = vmatpush1.bf16.msra.mxu1 %v3400_v62  ;;  %v5306_v9 = vld [vmem:[#allocation2_spill] sm:$0xff]  ;;  %v5307_v62 = vld [vmem:[#allocation3_spill] sm:$0xff] }
  0x7f   : > { %3307 = vmatprep.subr.bf16.mxu0 %v3911_v16  ;;  %3403 = vmatprep.subr.bf16.mxu1 %v3923_v20 }
  0x80   : > { %726 = vmatmul.mubr.f32.gmra.mrb[8].mxu0 %v5297_v51  ;;  %2108 = vmatmul.mubr.f32.gmra.mrb[8].mxu1 %v5297_v51  ;;  %v5321_v51 = vand.u32 4294901760, %v3933_v27  ;;  %v5328_v27 = vld [vmem:[#allocation30_spill] sm:$0xff] }
  0x81   : > { %731 = vmatprep.mubr.f32.mxu0 %v5259_v10  ;;  %2113 = vmatprep.mubr.f32.mxu1 %v5259_v10 }
  0x84   : > { %733 = vmatmul.mubr.f32.gmra.mrb[10].mxu0 %v5298_v26  ;;  %2115 = vmatmul.mubr.f32.gmra.mrb[10].mxu1 %v5298_v26  ;;  %v5320_v26 = vand.u32 4294901760, %v3931_v23  ;;  %v5327_v23 = vld [vmem:[#allocation26_spill] sm:$0xff] }
  0x85   : > { %738 = vmatprep.mubr.f32.mxu0 %v5259_v10  ;;  %2120 = vmatprep.mubr.f32.mxu1 %v5259_v10 }
  0x86   : > { %v3322_v4 = vpack.c.bf16 %v5321_v51, %v5320_v26  ;;  %v5333_v51 = vld [vmem:[#allocation44_spill] sm:$0xff]  ;;  %v5336_v26 = vand.u32 4294901760, %v3978_v46 }
  0x88   : > { %740 = vmatmul.mubr.f32.gmra.mrb[12].mxu0 %v5299_v22  ;;  %2122 = vmatmul.mubr.f32.gmra.mrb[12].mxu1 %v5299_v22  ;;  %v5319_v22 = vld [vmem:[#allocation13_spill] sm:$0xff] }
  0x89   : > { %745 = vmatprep.mubr.f32.mxu0 %v5259_v10  ;;  %2127 = vmatprep.mubr.f32.mxu1 %v5259_v10 }
  0x8c   : > { %747 = vmatmul.mubr.f32.gmra.mrb[14].mxu0 %v5300_v17  ;;  %2129 = vmatmul.mubr.f32.gmra.mrb[14].mxu1 %v5300_v17  ;;  %v5318_v17 = vld [vmem:[#allocation12_spill] sm:$0xff] }
  0x8d   : > { %752 = vmatprep.mubr.f32.mxu0 %v5259_v10  ;;  %2134 = vmatprep.mubr.f32.mxu1 %v5259_v10 }
  0x90   : > { %754 = vmatmul.mubr.f32.gmra.mrb[16].mxu0 %v5301_v3  ;;  %2136 = vmatmul.mubr.f32.gmra.mrb[16].mxu1 %v5301_v3  ;;  %v5317_v3 = vld [vmem:[#allocation11_spill] sm:$0xff] }
  0x91   : > { %759 = vmatprep.mubr.f32.mxu0 %v5259_v10  ;;  %2141 = vmatprep.mubr.f32.mxu1 %v5259_v10 }
  0x94   : > { %761 = vmatmul.mubr.f32.gmra.mrb[18].mxu0 %v4345_v43  ;;  %2143 = vmatmul.mubr.f32.gmra.mrb[18].mxu1 %v4345_v43  ;;  %v5315_v43 = vld [vmem:[#allocation21_spill] sm:$0xff] }
  0x95   : > { %766 = vmatprep.mubr.f32.mxu0 %v5259_v10  ;;  %2148 = vmatprep.mubr.f32.mxu1 %v5259_v10 }
  0x98   : > { %768 = vmatmul.mubr.f32.gmra.mrb[20].mxu0 %v5302_v15  ;;  %2150 = vmatmul.mubr.f32.gmra.mrb[20].mxu1 %v5302_v15  ;;  %v5314_v15 = vld [vmem:[#allocation9_spill] sm:$0xff] }
  0x99   : > { %773 = vmatprep.mubr.f32.mxu0 %v5259_v10  ;;  %2155 = vmatprep.mubr.f32.mxu1 %v5259_v10 }
  0x9c   : > { %775 = vmatmul.mubr.f32.gmra.mrb[22].mxu0 %v5303_v13  ;;  %2157 = vmatmul.mubr.f32.gmra.mrb[22].mxu1 %v5303_v13  ;;  %v5313_v13 = vld [vmem:[#allocation8_spill] sm:$0xff] }
  0x9d   : > { %780 = vmatprep.mubr.f32.mxu0 %v5259_v10  ;;  %2162 = vmatprep.mubr.f32.mxu1 %v5259_v10 }
  0xa0   : > { %782 = vmatmul.mubr.f32.gmra.mrb[24].mxu0 %v5304_v45  ;;  %2164 = vmatmul.mubr.f32.gmra.mrb[24].mxu1 %v5304_v45  ;;  %v5312_v45 = vld [vmem:[#allocation7_spill] sm:$0xff] }
  0xa1   : > { %787 = vmatprep.mubr.f32.mxu0 %v5259_v10  ;;  %2169 = vmatprep.mubr.f32.mxu1 %v5259_v10 }
  0xa4   : > { %789 = vmatmul.mubr.f32.gmra.mrb[26].mxu0 %v4442_v38  ;;  %2171 = vmatmul.mubr.f32.gmra.mrb[26].mxu1 %v4442_v38  ;;  %v5309_v38 = vld [vmem:[#allocation5_spill] sm:$0xff] }
  0xa5   : > { %794 = vmatprep.mubr.f32.mxu0 %v5259_v10  ;;  %2176 = vmatprep.mubr.f32.mxu1 %v5259_v10 }
  0xa8   : > { %796 = vmatmul.mubr.f32.gmra.mrb[28].mxu0 %v4458_v28  ;;  %2178 = vmatmul.mubr.f32.gmra.mrb[28].mxu1 %v4458_v28  ;;  %v5308_v28 = vld [vmem:[#allocation4_spill] sm:$0xff] }
  0xa9   : > { %801 = vmatprep.mubr.f32.mxu0 %v5259_v10  ;;  %2183 = vmatprep.mubr.f32.mxu1 %v5259_v10 }
  0xac   : > { %803 = vmatmul.mubr.f32.gmra.mrb[30].mxu0 %v4479_v29  ;;  %2185 = vmatmul.mubr.f32.gmra.mrb[30].mxu1 %v4479_v29  ;;  %v5310_v29 = vld [vmem:[#allocation19_spill] sm:$0xff] }
  0xad   : > { %905 = vmatprep.mubr.f32.mxu0 %v5259_v10  ;;  %2287 = vmatprep.mubr.f32.mxu1 %v5259_v10 }
  0xb0   : > { %908 = vmatmul.mubr.f32.vlgmr.msra.gmra.mrb[0].mxu0 %v5305_v2  ;;  %2290 = vmatmul.mubr.f32.vlgmr.msra.gmra.mrb[0].mxu1 %v5305_v2  ;;  %v5311_v2 = vld [vmem:[#allocation6_spill] sm:$0xff] }
  0xb1   : > { %3309 = vmatpush1.bf16.msra.mxu0 %v5306_v9  ;;  %3405 = vmatpush1.bf16.msra.mxu1 %v5307_v62 }
  0xb2   : > { %913 = vmatprep.mubr.f32.mxu0 %v5259_v10  ;;  %2295 = vmatprep.mubr.f32.mxu1 %v5259_v10 }
  0xb3   : > { %3311 = vmatprep.subr.bf16.mxu0 %v5308_v28  ;;  %3407 = vmatprep.subr.bf16.mxu1 %v5309_v38 }
  0xb4   : > { %916 = vmatmul.mubr.f32.gmra.mrb[2].mxu0 %v5310_v29  ;;  %2298 = vmatmul.mubr.f32.gmra.mrb[2].mxu1 %v5310_v29  ;;  %v5316_v29 = vld [vmem:[#allocation10_spill] sm:$0xff] }
  0xb5   : > { %921 = vmatprep.mubr.f32.mxu0 %v5259_v10  ;;  %2303 = vmatprep.mubr.f32.mxu1 %v5259_v10 }
  0xb6   : > { %3313 = vmatpush1.bf16.msra.mxu0 %v5311_v2  ;;  %3409 = vmatpush1.bf16.msra.mxu1 %v5312_v45 }
  0xb7   : > { %3315 = vmatprep.subr.bf16.mxu0 %v5313_v13  ;;  %3411 = vmatprep.subr.bf16.mxu1 %v5314_v15  ;;  %v5324_v13 = vld [vmem:[#allocation24_spill] sm:$0xff] }
  0xb8   : > { %924 = vmatmul.mubr.f32.gmra.mrb[4].mxu0 %v5315_v43  ;;  %2306 = vmatmul.mubr.f32.gmra.mrb[4].mxu1 %v5315_v43  ;;  %v5323_v43 = vand.u32 4294901760, %v3948_v35  ;;  %v5330_v35 = vld [vmem:[#allocation36_spill] sm:$0xff] }
  0xb9   : > { %929 = vmatprep.mubr.f32.mxu0 %v5259_v10  ;;  %2311 = vmatprep.mubr.f32.mxu1 %v5259_v10 }
  0xba   : > { %3317 = vmatpush1.bf16.msra.mxu0 %v5316_v29  ;;  %3413 = vmatpush1.bf16.msra.mxu1 %v5317_v3  ;;  %v3418_v15 = vpack.c.bf16 %v5323_v43, %v5322_v55  ;;  %v5332_v55 = vld [vmem:[#allocation43_spill] sm:$0xff]  ;;  %v5339_v43 = vand.u32 4294901760, %v3992_v57 }
  0xbb   : > { %3319 = vmatprep.subr.bf16.mxu0 %v5318_v17  ;;  %3415 = vmatprep.subr.bf16.mxu1 %v5319_v22  ;;  %v5325_v17 = vld [vmem:[#allocation14_spill] sm:$0xff]  ;;  %v5326_v22 = vld [vmem:[#allocation15_spill] sm:$0xff] }
  0xbc   : > { %932 = vmatmul.mubr.f32.gmra.mrb[6].mxu0 %v5324_v13  ;;  %2314 = vmatmul.mubr.f32.gmra.mrb[6].mxu1 %v5324_v13  ;;  %v5338_v13 = vand.u32 4294901760, %v3990_v56  ;;  %v5346_v56 = vand.u32 4294901760, %v4048_v24 }
  0xbd   : > { %937 = vmatprep.mubr.f32.mxu0 %v5259_v10  ;;  %2319 = vmatprep.mubr.f32.mxu1 %v5259_v10 }
  0xbe   : > { %3321 = vmatpush1.bf16.msra.mxu0 %v5325_v17  ;;  %3417 = vmatpush1.bf16.msra.mxu1 %v5326_v22 }
  0xbf   : > { %3323 = vmatprep.subr.bf16.mxu0 %v3322_v4  ;;  %3419 = vmatprep.subr.bf16.mxu1 %v3418_v15  ;;  %v5331_v4 = vld [vmem:[#allocation37_spill] sm:$0xff] }
  0xc0   : > { %940 = vmatmul.mubr.f32.gmra.mrb[8].mxu0 %v5327_v23  ;;  %2322 = vmatmul.mubr.f32.gmra.mrb[8].mxu1 %v5327_v23  ;;  %v3326_v23 = vpack.c.bf16 %v5339_v43, %v5338_v13  ;;  %v5372_v13 = vld [vmem:[#allocation47_spill] sm:$0xff]  ;;  %v5388_v43 = vld [vmem:[#allocation49_spill] sm:$0xff] }
  0xc1   : > { %945 = vmatprep.mubr.f32.mxu0 %v5259_v10  ;;  %2327 = vmatprep.mubr.f32.mxu1 %v5259_v10 }
  0xc4   : > { %948 = vmatmul.mubr.f32.gmra.mrb[10].mxu0 %v5328_v27  ;;  %2330 = vmatmul.mubr.f32.gmra.mrb[10].mxu1 %v5328_v27  ;;  %v5341_v27 = vand.u32 4294901760, %v4008_v0  ;;  %v5348_v0 = vand.u32 4294901760, %v4071_v32  ;;  %v5355_v32 = vand.u32 4294901760, %v4097_v54 }
  0xc5   : > { %953 = vmatprep.mubr.f32.mxu0 %v5259_v10  ;;  %2335 = vmatprep.mubr.f32.mxu1 %v5259_v10 }
  0xc8   : > { %956 = vmatmul.mubr.f32.gmra.mrb[12].mxu0 %v5329_v34  ;;  %2338 = vmatmul.mubr.f32.gmra.mrb[12].mxu1 %v5329_v34 }
  0xc9   : > { %961 = vmatprep.mubr.f32.mxu0 %v5259_v10  ;;  %2343 = vmatprep.mubr.f32.mxu1 %v5259_v10 }
  0xcc   : > { %964 = vmatmul.mubr.f32.gmra.mrb[14].mxu0 %v5330_v35  ;;  %2346 = vmatmul.mubr.f32.gmra.mrb[14].mxu1 %v5330_v35  ;;  %v5342_v35 = vld [vmem:[#allocation17_spill] sm:$0xff] }
  0xcd   : > { %969 = vmatprep.mubr.f32.mxu0 %v5259_v10  ;;  %2351 = vmatprep.mubr.f32.mxu1 %v5259_v10 }
  0xd0   : > { %972 = vmatmul.mubr.f32.gmra.mrb[16].mxu0 %v5331_v4  ;;  %2354 = vmatmul.mubr.f32.gmra.mrb[16].mxu1 %v5331_v4 }
  0xd1   : > { %977 = vmatprep.mubr.f32.mxu0 %v5259_v10  ;;  %2359 = vmatprep.mubr.f32.mxu1 %v5259_v10 }
  0xd4   : > { %980 = vmatmul.mubr.f32.gmra.mrb[18].mxu0 %v5332_v55  ;;  %2362 = vmatmul.mubr.f32.gmra.mrb[18].mxu1 %v5332_v55  ;;  %v5349_v55 = vand.u32 4294901760, %v4073_v33 }
  0xd5   : > { %985 = vmatprep.mubr.f32.mxu0 %v5259_v10  ;;  %2367 = vmatprep.mubr.f32.mxu1 %v5259_v10 }
  0xd8   : > { %988 = vmatmul.mubr.f32.gmra.mrb[20].mxu0 %v5333_v51  ;;  %2370 = vmatmul.mubr.f32.gmra.mrb[20].mxu1 %v5333_v51  ;;  %v5350_v51 = vand.u32 4294901760, %v4075_v37  ;;  %v5356_v37 = vand.u32 4294901760, %v4103_v60  ;;  %v5363_v60 = vand.u32 4294901760, %v4382_v11  ;;  %v5371_v11 = vld [vmem:[#allocation45_spill] sm:$0xff] }
  0xd9   : > { %993 = vmatprep.mubr.f32.mxu0 %v5259_v10  ;;  %2375 = vmatprep.mubr.f32.mxu1 %v5259_v10 }
  0xdc   : > { %996 = vmatmul.mubr.f32.gmra.mrb[22].mxu0 %v4406_v52  ;;  %2378 = vmatmul.mubr.f32.gmra.mrb[22].mxu1 %v4406_v52  ;;  %v5335_v52 = vand.u32 4294901760, %v3968_v42  ;;  %v5344_v42 = vand.u32 4294901760, %v4028_v7  ;;  %v5352_v7 = vand.u32 4294901760, %v4081_v49 }
  0xdd   : > { %1001 = vmatprep.mubr.f32.mxu0 %v5259_v10  ;;  %2383 = vmatprep.mubr.f32.mxu1 %v5259_v10 }
  0xe0   : > { %1004 = vmatmul.mubr.f32.gmra.mrb[24].mxu0 %v4417_v21  ;;  %2386 = vmatmul.mubr.f32.gmra.mrb[24].mxu1 %v4417_v21  ;;  %v5334_v21 = vand.u32 4294901760, %v3966_v41  ;;  %v5343_v41 = vand.u32 4294901760, %v4026_v6  ;;  %v3426_v6 = vpack.c.bf16 %v5350_v51, %v5349_v55 }
  0xe1   : > { %1009 = vmatprep.mubr.f32.mxu0 %v5259_v10  ;;  %2391 = vmatprep.mubr.f32.mxu1 %v5259_v10 }
  0xe2   : > { %v3328_v46 = vpack.c.bf16 %v5344_v42, %v5343_v41 }
  0xe4   : > { %1012 = vmatmul.mubr.f32.gmra.mrb[26].mxu0 %v4456_v31  ;;  %2394 = vmatmul.mubr.f32.gmra.mrb[26].mxu1 %v4456_v31  ;;  %v3324_v31 = vpack.c.bf16 %v5335_v52, %v5334_v21  ;;  %v5351_v21 = vld [vmem:[#allocation23_spill] sm:$0xff]  ;;  %v5357_v52 = vand.u32 4294901760, %v4105_v12  ;;  %v5364_v12 = vand.u32 4294901760, %v4387_v59  ;;  %v5367_v59 = vld [vmem:[#allocation34_spill] sm:$0xff] }
  0xe5   : > { %1017 = vmatprep.mubr.f32.mxu0 %v5259_v10  ;;  %2399 = vmatprep.mubr.f32.mxu1 %v5259_v10 }
  0xe8   : > { %1020 = vmatmul.mubr.f32.gmra.mrb[28].mxu0 %v4477_v19  ;;  %2402 = vmatmul.mubr.f32.gmra.mrb[28].mxu1 %v4477_v19  ;;  %v5337_v19 = vand.u32 4294901760, %v3980_v47  ;;  %v5345_v47 = vand.u32 4294901760, %v4030_v8  ;;  %v5353_v8 = vand.u32 4294901760, %v4083_v50  ;;  %v5361_v50 = vand.u32 4294901760, %v4308_v53  ;;  %v5368_v53 = vld [vmem:[#allocation38_spill] sm:$0xff] }
  0xe9   : > { %1025 = vmatprep.mubr.f32.mxu0 %v5259_v10  ;;  %2407 = vmatprep.mubr.f32.mxu1 %v5259_v10 }
  0xea   : > { %v3420_v15 = vpack.c.bf16 %v5337_v19, %v5336_v26  ;;  %v3424_v57 = vpack.c.bf16 %v5346_v56, %v5345_v47  ;;  %v3332_v24 = vpack.c.bf16 %v5353_v8, %v5352_v7  ;;  %v5358_v26 = vand.u32 4294901760, %v4119_v14 }
  0xeb   : > { %v5359_v19 = vand.u32 4294901760, %v4297_v39  ;;  %v3432_v14 = vpack.c.bf16 %v5364_v12, %v5363_v60  ;;  %v5365_v39 = vld [vmem:[#allocation27_spill] sm:$0xff] }
  0xec   : > { %1028 = vmatmul.mubr.f32.gmra.mrb[30].mxu0 %v4489_v30  ;;  %2410 = vmatmul.mubr.f32.gmra.mrb[30].mxu1 %v4489_v30  ;;  %v5340_v30 = vand.u32 4294901760, %v4006_v63  ;;  %v5347_v63 = vand.u32 4294901760, %v4050_v25  ;;  %v5354_v25 = vand.u32 4294901760, %v4091_v40  ;;  %v5362_v40 = vand.u32 4294901760, %v4318_v36  ;;  %v5366_v36 = vld [vmem:[#allocation28_spill] sm:$0xff] }
  0xed   : > { %1114 = vmatprep.mubr.f32.mxu0 %v5259_v10  ;;  %2496 = vmatprep.mubr.f32.mxu1 %v5259_v10  ;;  %v3430_v49 = vpack.c.bf16 %v5359_v19, %v5358_v26 }
  0xee   : > { %v3422_v34 = vpack.c.bf16 %v5341_v27, %v5340_v30  ;;  %v3330_v4 = vpack.c.bf16 %v5348_v0, %v5347_v63  ;;  %v3428_v33 = vpack.c.bf16 %v5355_v32, %v5354_v25  ;;  %v3336_v54 = vpack.c.bf16 %v5362_v40, %v5361_v50  ;;  %v5390_v30 = vld [vmem:[#allocation51_spill] sm:$0xff] }
  0xf0   : > { %1118 = vmatmul.mubr.f32.vlgmr.msra.gmra.mrb[0].mxu0 %v5342_v35  ;;  %2500 = vmatmul.mubr.f32.vlgmr.msra.gmra.mrb[0].mxu1 %v5342_v35  ;;  %v224_v35 = vld [vmem:[%s5092_s2] sm:$0xf] }
  0xf1   : > { %3325 = vmatpush1.bf16.msra.mxu0 %v3324_v31  ;;  %3421 = vmatpush1.bf16.msra.mxu1 %v3420_v15  ;;  %v3334_v31 = vpack.c.bf16 %v5357_v52, %v5356_v37  ;;  %v5360_v15 = vld [vmem:[#allocation25_spill] sm:$0xff] }
  0xf2   : > { %1123 = vmatprep.mubr.f32.mxu0 %v5259_v10  ;;  %2505 = vmatprep.mubr.f32.mxu1 %v5259_v10 }
  0xf3   : > { %3327 = vmatprep.subr.bf16.mxu0 %v3326_v23  ;;  %3423 = vmatprep.subr.bf16.mxu1 %v3422_v34  ;;  %v5389_v23 = vld [vmem:[#allocation50_spill] sm:$0xff] }
  0xf4   : > { %1127 = vmatmul.mubr.f32.gmra.mrb[2].mxu0 %v5351_v21  ;;  %2509 = vmatmul.mubr.f32.gmra.mrb[2].mxu1 %v5351_v21 }
  0xf5   : > { %1132 = vmatprep.mubr.f32.mxu0 %v5259_v10  ;;  %2514 = vmatprep.mubr.f32.mxu1 %v5259_v10 }
  0xf6   : > { %3329 = vmatpush1.bf16.msra.mxu0 %v3328_v46  ;;  %3425 = vmatpush1.bf16.msra.mxu1 %v3424_v57 }
  0xf7   : > { %3331 = vmatprep.subr.bf16.mxu0 %v3330_v4  ;;  %3427 = vmatprep.subr.bf16.mxu1 %v3426_v6 }
  0xf8   : > { %1136 = vmatmul.mubr.f32.gmra.mrb[4].mxu0 %v5360_v15  ;;  %2518 = vmatmul.mubr.f32.gmra.mrb[4].mxu1 %v5360_v15 }
  0xf9   : > { %1141 = vmatprep.mubr.f32.mxu0 %v5259_v10  ;;  %2523 = vmatprep.mubr.f32.mxu1 %v5259_v10 }
  0xfa   : > { %3333 = vmatpush1.bf16.msra.mxu0 %v3332_v24  ;;  %3429 = vmatpush1.bf16.msra.mxu1 %v3428_v33 }
  0xfb   : > { %3335 = vmatprep.subr.bf16.mxu0 %v3334_v31  ;;  %3431 = vmatprep.subr.bf16.mxu1 %v3430_v49 }
  0xfc   : > { %1145 = vmatmul.mubr.f32.gmra.mrb[6].mxu0 %v5365_v39  ;;  %2527 = vmatmul.mubr.f32.gmra.mrb[6].mxu1 %v5365_v39 }
  0xfd   : > { %1150 = vmatprep.mubr.f32.mxu0 %v5259_v10  ;;  %2532 = vmatprep.mubr.f32.mxu1 %v5259_v10 }
  0xfe   : > { %3337 = vmatpush1.bf16.msra.mxu0 %v3336_v54  ;;  %3433 = vmatpush1.bf16.msra.mxu1 %v3432_v14 }
  0xff   : > { %3339 = vmatprep.subr.bf16.mxu0 %v3911_v16  ;;  %3435 = vmatprep.subr.bf16.mxu1 %v3923_v20  ;;  %v5369_v16 = vld [vmem:[#allocation39_spill] sm:$0xff]  ;;  %v5370_v20 = vld [vmem:[#allocation40_spill] sm:$0xff] }
 0x100   : > { %1154 = vmatmul.mubr.f32.gmra.mrb[8].mxu0 %v5366_v36  ;;  %2536 = vmatmul.mubr.f32.gmra.mrb[8].mxu1 %v5366_v36 }
 0x101   : > { %1159 = vmatprep.mubr.f32.mxu0 %v5259_v10  ;;  %2541 = vmatprep.mubr.f32.mxu1 %v5259_v10 }
 0x104   : > { %1163 = vmatmul.mubr.f32.gmra.mrb[10].mxu0 %v5367_v59  ;;  %2545 = vmatmul.mubr.f32.gmra.mrb[10].mxu1 %v5367_v59 }
 0x105   : > { %1168 = vmatprep.mubr.f32.mxu0 %v5259_v10  ;;  %2550 = vmatprep.mubr.f32.mxu1 %v5259_v10 }
 0x108   : > { %1172 = vmatmul.mubr.f32.gmra.mrb[12].mxu0 %v5368_v53  ;;  %2554 = vmatmul.mubr.f32.gmra.mrb[12].mxu1 %v5368_v53 }
 0x109   : > { %1177 = vmatprep.mubr.f32.mxu0 %v5259_v10  ;;  %2559 = vmatprep.mubr.f32.mxu1 %v5259_v10 }
 0x10c   : > { %1181 = vmatmul.mubr.f32.gmra.mrb[14].mxu0 %v5369_v16  ;;  %2563 = vmatmul.mubr.f32.gmra.mrb[14].mxu1 %v5369_v16 }
 0x10d   : > { %1186 = vmatprep.mubr.f32.mxu0 %v5259_v10  ;;  %2568 = vmatprep.mubr.f32.mxu1 %v5259_v10 }
 0x110   : > { %1190 = vmatmul.mubr.f32.gmra.mrb[16].mxu0 %v5370_v20  ;;  %2572 = vmatmul.mubr.f32.gmra.mrb[16].mxu1 %v5370_v20 }
 0x111   : > { %1195 = vmatprep.mubr.f32.mxu0 %v5259_v10  ;;  %2577 = vmatprep.mubr.f32.mxu1 %v5259_v10 }
 0x114   : > { %1199 = vmatmul.mubr.f32.gmra.mrb[18].mxu0 %v5371_v11  ;;  %2581 = vmatmul.mubr.f32.gmra.mrb[18].mxu1 %v5371_v11 }
 0x115   : > { %1204 = vmatprep.mubr.f32.mxu0 %v5259_v10  ;;  %2586 = vmatprep.mubr.f32.mxu1 %v5259_v10 }
 0x118   : > { %1208 = vmatmul.mubr.f32.gmra.mrb[20].mxu0 %v5372_v13  ;;  %2590 = vmatmul.mubr.f32.gmra.mrb[20].mxu1 %v5372_v13 }
 0x119   : > { %1213 = vmatprep.mubr.f32.mxu0 %v5259_v10  ;;  %2595 = vmatprep.mubr.f32.mxu1 %v5259_v10 }
 0x11c   : > { %1217 = vmatmul.mubr.f32.gmra.mrb[22].mxu0 %v4428_v18  ;;  %2599 = vmatmul.mubr.f32.gmra.mrb[22].mxu1 %v4428_v18  ;;  %v5373_v18 = vld [vmem:[#allocation8_spill] sm:$0xff] }
 0x11d   : > { %1222 = vmatprep.mubr.f32.mxu0 %v5259_v10  ;;  %2604 = vmatprep.mubr.f32.mxu1 %v5259_v10 }
 0x120   : > { %1226 = vmatmul.mubr.f32.gmra.mrb[24].mxu0 %v4446_v61  ;;  %2608 = vmatmul.mubr.f32.gmra.mrb[24].mxu1 %v4446_v61  ;;  %v5374_v61 = vld [vmem:[#allocation9_spill] sm:$0xff] }
 0x121   : > { %1231 = vmatprep.mubr.f32.mxu0 %v5259_v10  ;;  %2613 = vmatprep.mubr.f32.mxu1 %v5259_v10 }
 0x124   : > { %1235 = vmatmul.mubr.f32.gmra.mrb[26].mxu0 %v4474_v5  ;;  %2617 = vmatmul.mubr.f32.gmra.mrb[26].mxu1 %v4474_v5  ;;  %v5375_v5 = vld [vmem:[#allocation18_spill] sm:$0xff] }
 0x125   : > { %1240 = vmatprep.mubr.f32.mxu0 %v5259_v10  ;;  %2622 = vmatprep.mubr.f32.mxu1 %v5259_v10 }
 0x128   : > { %1244 = vmatmul.mubr.f32.gmra.mrb[28].mxu0 %v4486_v58  ;;  %2626 = vmatmul.mubr.f32.gmra.mrb[28].mxu1 %v4486_v58  ;;  %v5378_v58 = vld [vmem:[#allocation20_spill] sm:$0xff] }
 0x129   : > { %1249 = vmatprep.mubr.f32.mxu0 %v5259_v10  ;;  %2631 = vmatprep.mubr.f32.mxu1 %v5259_v10 }
 0x12c   : > { %1253 = vmatmul.mubr.f32.gmra.mrb[30].mxu0 %v4496_v44  ;;  %2635 = vmatmul.mubr.f32.gmra.mrb[30].mxu1 %v4496_v44  ;;  %v5379_v44 = vld [vmem:[#allocation22_spill] sm:$0xff] }
 0x12d   : > { %1371 = vmatprep.mubr.f32.mxu0 %v5259_v10  ;;  %2753 = vmatprep.mubr.f32.mxu1 %v5259_v10 }
 0x130   : > { %1373 = vmatmul.mubr.f32.vlgmr.msra.gmra.mrb[0].mxu0 %v4121_v48  ;;  %2755 = vmatmul.mubr.f32.vlgmr.msra.gmra.mrb[0].mxu1 %v4121_v48 }
 0x131   : > { %3341 = vmatpush1.bf16.msra.mxu0 %v5306_v9  ;;  %3437 = vmatpush1.bf16.msra.mxu1 %v5307_v62  ;;  %v5384_v9 = vld [vmem:[#allocation41_spill] sm:$0xff]  ;;  %v5385_v62 = vld [vmem:[#allocation42_spill] sm:$0xff] }
 0x132   : > { %1378 = vmatprep.mubr.f32.mxu0 %v5259_v10  ;;  %2760 = vmatprep.mubr.f32.mxu1 %v5259_v10 }
 0x133   : > { %3343 = vmatprep.subr.bf16.mxu0 %v5308_v28  ;;  %3439 = vmatprep.subr.bf16.mxu1 %v5309_v38  ;;  %v5376_v38 = vld [vmem:[#allocation12_spill] sm:$0xff]  ;;  %v5377_v28 = vld [vmem:[#allocation13_spill] sm:$0xff] }
 0x134   : > { %1380 = vmatmul.mubr.f32.gmra.mrb[2].mxu0 %v4168_v1  ;;  %2762 = vmatmul.mubr.f32.gmra.mrb[2].mxu1 %v4168_v1 }
 0x135   : > { %1385 = vmatprep.mubr.f32.mxu0 %v5259_v10  ;;  %2767 = vmatprep.mubr.f32.mxu1 %v5259_v10 }
 0x136   : > { %3345 = vmatpush1.bf16.msra.mxu0 %v5311_v2  ;;  %3441 = vmatpush1.bf16.msra.mxu1 %v5312_v45  ;;  %v5381_v45 = vld [vmem:[#allocation31_spill] sm:$0xff]  ;;  %v5386_v2 = vld [vmem:[#allocation46_spill] sm:$0xff] }
 0x137   : > { %3347 = vmatprep.subr.bf16.mxu0 %v5373_v18  ;;  %3443 = vmatprep.subr.bf16.mxu1 %v5374_v61 }
 0x138   : > { %1387 = vmatmul.mubr.f32.gmra.mrb[4].mxu0 %v5375_v5  ;;  %2769 = vmatmul.mubr.f32.gmra.mrb[4].mxu1 %v5375_v5 }
 0x139   : > { %1392 = vmatprep.mubr.f32.mxu0 %v5259_v10  ;;  %2774 = vmatprep.mubr.f32.mxu1 %v5259_v10 }
 0x13a   : > { %3349 = vmatpush1.bf16.msra.mxu0 %v5316_v29  ;;  %3445 = vmatpush1.bf16.msra.mxu1 %v5317_v3  ;;  %v5380_v3 = vld [vmem:[#allocation29_spill] sm:$0xff]  ;;  %v5387_v29 = vld [vmem:[#allocation48_spill] sm:$0xff] }
 0x13b   : > { %3351 = vmatprep.subr.bf16.mxu0 %v5376_v38  ;;  %3447 = vmatprep.subr.bf16.mxu1 %v5377_v28 }
 0x13c   : > { %1394 = vmatmul.mubr.f32.gmra.mrb[6].mxu0 %v5378_v58  ;;  %2776 = vmatmul.mubr.f32.gmra.mrb[6].mxu1 %v5378_v58 }
 0x13d   : > { %1399 = vmatprep.mubr.f32.mxu0 %v5259_v10  ;;  %2781 = vmatprep.mubr.f32.mxu1 %v5259_v10 }
 0x13e   : > { %3353 = vmatpush1.bf16.msra.mxu0 %v5325_v17  ;;  %3449 = vmatpush1.bf16.msra.mxu1 %v5326_v22  ;;  %v5382_v22 = vld [vmem:[#allocation32_spill] sm:$0xff]  ;;  %v5383_v17 = vld [vmem:[#allocation33_spill] sm:$0xff] }
 0x140   : > { %1401 = vmatmul.mubr.f32.gmra.mrb[8].mxu0 %v5379_v44  ;;  %2783 = vmatmul.mubr.f32.gmra.mrb[8].mxu1 %v5379_v44 }
 0x141   : > { %1406 = vmatprep.mubr.f32.mxu0 %v5259_v10  ;;  %2788 = vmatprep.mubr.f32.mxu1 %v5259_v10 }
 0x144   : > { %1408 = vmatmul.mubr.f32.gmra.mrb[10].mxu0 %v5380_v3  ;;  %2790 = vmatmul.mubr.f32.gmra.mrb[10].mxu1 %v5380_v3 }
 0x145   : > { %1413 = vmatprep.mubr.f32.mxu0 %v5259_v10  ;;  %2795 = vmatprep.mubr.f32.mxu1 %v5259_v10 }
 0x148   : > { %1415 = vmatmul.mubr.f32.gmra.mrb[12].mxu0 %v5381_v45  ;;  %2797 = vmatmul.mubr.f32.gmra.mrb[12].mxu1 %v5381_v45 }
 0x149   : > { %1420 = vmatprep.mubr.f32.mxu0 %v5259_v10  ;;  %2802 = vmatprep.mubr.f32.mxu1 %v5259_v10 }
 0x14c   : > { %1422 = vmatmul.mubr.f32.gmra.mrb[14].mxu0 %v5382_v22  ;;  %2804 = vmatmul.mubr.f32.gmra.mrb[14].mxu1 %v5382_v22 }
 0x14d   : > { %1427 = vmatprep.mubr.f32.mxu0 %v5259_v10  ;;  %2809 = vmatprep.mubr.f32.mxu1 %v5259_v10 }
 0x150   : > { %1429 = vmatmul.mubr.f32.gmra.mrb[16].mxu0 %v5383_v17  ;;  %2811 = vmatmul.mubr.f32.gmra.mrb[16].mxu1 %v5383_v17 }
 0x151   : > { %1434 = vmatprep.mubr.f32.mxu0 %v5259_v10  ;;  %2816 = vmatprep.mubr.f32.mxu1 %v5259_v10 }
 0x154   : > { %1436 = vmatmul.mubr.f32.gmra.mrb[18].mxu0 %v5384_v9  ;;  %2818 = vmatmul.mubr.f32.gmra.mrb[18].mxu1 %v5384_v9 }
 0x155   : > { %1441 = vmatprep.mubr.f32.mxu0 %v5259_v10  ;;  %2823 = vmatprep.mubr.f32.mxu1 %v5259_v10 }
 0x158   : > { %1443 = vmatmul.mubr.f32.gmra.mrb[20].mxu0 %v5385_v62  ;;  %2825 = vmatmul.mubr.f32.gmra.mrb[20].mxu1 %v5385_v62 }
 0x159   : > { %1448 = vmatprep.mubr.f32.mxu0 %v5259_v10  ;;  %2830 = vmatprep.mubr.f32.mxu1 %v5259_v10 }
 0x15c   : > { %1450 = vmatmul.mubr.f32.gmra.mrb[22].mxu0 %v5386_v2  ;;  %2832 = vmatmul.mubr.f32.gmra.mrb[22].mxu1 %v5386_v2 }
 0x15d   : > { %1455 = vmatprep.mubr.f32.mxu0 %v5259_v10  ;;  %2837 = vmatprep.mubr.f32.mxu1 %v5259_v10 }
 0x160   : > { %1457 = vmatmul.mubr.f32.gmra.mrb[24].mxu0 %v5387_v29  ;;  %2839 = vmatmul.mubr.f32.gmra.mrb[24].mxu1 %v5387_v29 }
 0x161   : > { %1462 = vmatprep.mubr.f32.mxu0 %v5259_v10  ;;  %2844 = vmatprep.mubr.f32.mxu1 %v5259_v10 }
 0x164   : > { %1464 = vmatmul.mubr.f32.gmra.mrb[26].mxu0 %v5388_v43  ;;  %2846 = vmatmul.mubr.f32.gmra.mrb[26].mxu1 %v5388_v43 }
 0x165   : > { %1469 = vmatprep.mubr.f32.mxu0 %v5259_v10  ;;  %2851 = vmatprep.mubr.f32.mxu1 %v5259_v10 }
 0x168   : > { %1471 = vmatmul.mubr.f32.gmra.mrb[28].mxu0 %v5389_v23  ;;  %2853 = vmatmul.mubr.f32.gmra.mrb[28].mxu1 %v5389_v23 }
 0x169   : > { %1476 = vmatprep.mubr.f32.mxu0 %v5259_v10  ;;  %2858 = vmatprep.mubr.f32.mxu1 %v5259_v10 }
 0x16c   : > { %1478 = vmatmul.mubr.f32.gmra.mrb[30].mxu0 %v5390_v30  ;;  %2860 = vmatmul.mubr.f32.gmra.mrb[30].mxu1 %v5390_v30 }
 0x16d   : > { %1564 = vmatprep.mubr.f32.mxu0 %v5259_v10  ;;  %2946 = vmatprep.mubr.f32.mxu1 %v5259_v10 }
 0x170   : > { %1566 = vmatmul.mubr.f32.vlgmr.msra.gmra.mrb[0].mxu0 %v4121_v48  ;;  %2948 = vmatmul.mubr.f32.vlgmr.msra.gmra.mrb[0].mxu1 %v4121_v48 }
 0x171   : > { %1571 = vmatprep.mubr.f32.mxu0 %v5259_v10  ;;  %2953 = vmatprep.mubr.f32.mxu1 %v5259_v10 }
 0x174   : > { %1573 = vmatmul.mubr.f32.gmra.mrb[2].mxu0 %v4168_v1  ;;  %2955 = vmatmul.mubr.f32.gmra.mrb[2].mxu1 %v4168_v1  ;;  %v226_v1 = vlaneseq }
 0x175   : > { %1578 = vmatprep.mubr.f32.mxu0 %v5259_v10  ;;  %2960 = vmatprep.mubr.f32.mxu1 %v5259_v10 }
 0x176   : > { %v227_v48 = vshrl.u32 %v226_v1, 7 }
 0x178   : > { %1580 = vmatmul.mubr.f32.gmra.mrb[4].mxu0 %v5375_v5  ;;  %2962 = vmatmul.mubr.f32.gmra.mrb[4].mxu1 %v5375_v5  ;;  %v228_v27 = vsub.s32 0, %v227_v48  ;;  %v236_v34 = vsub.s32 2, %v227_v48  ;;  %v232_v41 = vsub.s32 1, %v227_v48  ;;  %v240_v42 = vsub.s32 3, %v227_v48 }
 0x179   : > { %1585 = vmatprep.mubr.f32.mxu0 %v5259_v10  ;;  %2967 = vmatprep.mubr.f32.mxu1 %v5259_v10 }
 0x17a   : > { %v4945_v46 = vrot.slane %v224_v35, %v228_v27  ;;  %v4947_v47 = vrot.slane %v224_v35, %v236_v34  ;;  %v4949_v56 = vrot.slane %v224_v35, %v232_v41 }
 0x17c   : > { %1587 = vmatmul.mubr.f32.gmra.mrb[6].mxu0 %v5378_v58  ;;  %2969 = vmatmul.mubr.f32.gmra.mrb[6].mxu1 %v5378_v58 }
 0x17d   : > { %1592 = vmatprep.mubr.f32.mxu0 %v5259_v10  ;;  %2974 = vmatprep.mubr.f32.mxu1 %v5259_v10 }
 0x180   : > { %1594 = vmatmul.mubr.f32.gmra.mrb[8].mxu0 %v5379_v44  ;;  %2976 = vmatmul.mubr.f32.gmra.mrb[8].mxu1 %v5379_v44 }
 0x181   : > { %1599 = vmatprep.mubr.f32.mxu0 %v5259_v10  ;;  %2981 = vmatprep.mubr.f32.mxu1 %v5259_v10 }
 0x184   : > { %1601 = vmatmul.mubr.f32.gmra.mrb[10].mxu0 %v5380_v3  ;;  %2983 = vmatmul.mubr.f32.gmra.mrb[10].mxu1 %v5380_v3 }
 0x185   : > { %1606 = vmatprep.mubr.f32.mxu0 %v5259_v10  ;;  %2988 = vmatprep.mubr.f32.mxu1 %v5259_v10 }
 0x188   : > { %1608 = vmatmul.mubr.f32.gmra.mrb[12].mxu0 %v5381_v45  ;;  %2990 = vmatmul.mubr.f32.gmra.mrb[12].mxu1 %v5381_v45 }
 0x189   : > { %1613 = vmatprep.mubr.f32.mxu0 %v5259_v10  ;;  %2995 = vmatprep.mubr.f32.mxu1 %v5259_v10 }
 0x18c   : > { %1615 = vmatmul.mubr.f32.gmra.mrb[14].mxu0 %v5382_v22  ;;  %2997 = vmatmul.mubr.f32.gmra.mrb[14].mxu1 %v5382_v22 }
 0x18d   : > { %1620 = vmatprep.mubr.f32.mxu0 %v5259_v10  ;;  %3002 = vmatprep.mubr.f32.mxu1 %v5259_v10 }
 0x190   : > { %1622 = vmatmul.mubr.f32.gmra.mrb[16].mxu0 %v5383_v17  ;;  %3004 = vmatmul.mubr.f32.gmra.mrb[16].mxu1 %v5383_v17 }
 0x191   : > { %1627 = vmatprep.mubr.f32.mxu0 %v5259_v10  ;;  %3009 = vmatprep.mubr.f32.mxu1 %v5259_v10 }
 0x194   : > { %1629 = vmatmul.mubr.f32.gmra.mrb[18].mxu0 %v5384_v9  ;;  %3011 = vmatmul.mubr.f32.gmra.mrb[18].mxu1 %v5384_v9 }
 0x195   : > { %1634 = vmatprep.mubr.f32.mxu0 %v5259_v10  ;;  %3016 = vmatprep.mubr.f32.mxu1 %v5259_v10 }
 0x198   : > { %1636 = vmatmul.mubr.f32.gmra.mrb[20].mxu0 %v5385_v62  ;;  %3018 = vmatmul.mubr.f32.gmra.mrb[20].mxu1 %v5385_v62 }
 0x199   : > { %1641 = vmatprep.mubr.f32.mxu0 %v5259_v10  ;;  %3023 = vmatprep.mubr.f32.mxu1 %v5259_v10 }
 0x19c   : > { %1643 = vmatmul.mubr.f32.gmra.mrb[22].mxu0 %v5386_v2  ;;  %3025 = vmatmul.mubr.f32.gmra.mrb[22].mxu1 %v5386_v2 }
 0x19d   : > { %1648 = vmatprep.mubr.f32.mxu0 %v5259_v10  ;;  %3030 = vmatprep.mubr.f32.mxu1 %v5259_v10 }
 0x1a0   : > { %1650 = vmatmul.mubr.f32.gmra.mrb[24].mxu0 %v5387_v29  ;;  %3032 = vmatmul.mubr.f32.gmra.mrb[24].mxu1 %v5387_v29 }
 0x1a1   : > { %1655 = vmatprep.mubr.f32.mxu0 %v5259_v10  ;;  %3037 = vmatprep.mubr.f32.mxu1 %v5259_v10 }
 0x1a4   : > { %1657 = vmatmul.mubr.f32.gmra.mrb[26].mxu0 %v5388_v43  ;;  %3039 = vmatmul.mubr.f32.gmra.mrb[26].mxu1 %v5388_v43 }
 0x1a5   : > { %1662 = vmatprep.mubr.f32.mxu0 %v5259_v10  ;;  %3044 = vmatprep.mubr.f32.mxu1 %v5259_v10 }
 0x1a8   : > { %1664 = vmatmul.mubr.f32.gmra.mrb[28].mxu0 %v5389_v23  ;;  %3046 = vmatmul.mubr.f32.gmra.mrb[28].mxu1 %v5389_v23 }
 0x1a9   : > { %1669 = vmatprep.mubr.f32.mxu0 %v5259_v10  ;;  %3051 = vmatprep.mubr.f32.mxu1 %v5259_v10  ;;  %v4951_v10 = vrot.slane %v224_v35, %v240_v42 }
 0x1ac   : > { %1671 = vmatmul.mubr.f32.gmra.mrb[30].mxu0 %v5390_v30  ;;  %3053 = vmatmul.mubr.f32.gmra.mrb[30].mxu1 %v5390_v30 }
 0x243   : > { %v1567_v57 = vpop.f32.mrb[0].mxu0  ;;  %v2949_v63 = vpop.f32.mrb[0].mxu1 }
 0x244   : > { %v3450_v0 = vadd.f32 %v1567_v57, %v4945_v46  ;;  %v3482_v4 = vadd.f32 %v2949_v63, %v4947_v47  ;;  %v1569_v55 = vpop.f32.mrb[1].mxu0  ;;  %v2951_v51 = vpop.f32.mrb[1].mxu1 }
 0x245   : > { %v3451_v6 = vadd.f32 %v1569_v55, %v4949_v56  ;;  %v3483_v21 = vadd.f32 %v2951_v51, %v4951_v10 }
 0x246   : > { %v3059_v7 = vmax.f32 %v3450_v0, 0.0  ;;  %v3061_v8 = vmax.f32 %v3482_v4, 0.0 }
 0x247   : > { %v3060_v24 = vmax.f32 %v3451_v6, 0.0  ;;  %v3062_v25 = vmax.f32 %v3483_v21, 0.0  ;;  %v1574_v32 = vpop.f32.mrb[2].mxu0  ;;  %v2956_v33 = vpop.f32.mrb[2].mxu1 }
 0x248   : > { %3123 = vst [vmem:[%s4959_s11] sm:$0xff] %v3059_v7  ;;  %3125 = vst [vmem:[%s4959_s11 + $0x10] sm:$0xff] %v3061_v8  ;;  %v3452_v37 = vadd.f32 %v1574_v32, %v4945_v46  ;;  %v3484_v52 = vadd.f32 %v2956_v33, %v4947_v47  ;;  %v1576_v31 = vpop.f32.mrb[3].mxu0  ;;  %v2958_v26 = vpop.f32.mrb[3].mxu1 }
 0x249   : > { %3124 = vst [vmem:[%s4959_s11 + $0x8] sm:$0xff] %v3060_v24  ;;  %3126 = vst [vmem:[%s4959_s11 + $0x18] sm:$0xff] %v3062_v25  ;;  %v3453_v19 = vadd.f32 %v1576_v31, %v4949_v56  ;;  %v3485_v49 = vadd.f32 %v2958_v26, %v4951_v10 }
 0x24a   : > { %v3063_v15 = vmax.f32 %v3452_v37, 0.0  ;;  %v3065_v50 = vmax.f32 %v3484_v52, 0.0 }
 0x24b   : > { %v3064_v40 = vmax.f32 %v3453_v19, 0.0  ;;  %v3066_v54 = vmax.f32 %v3485_v49, 0.0  ;;  %v1581_v60 = vpop.f32.mrb[4].mxu0  ;;  %v2963_v12 = vpop.f32.mrb[4].mxu1 }
 0x24c   : > { %3127 = vst [vmem:[%s4959_s11 + $0x20] sm:$0xff] %v3063_v15  ;;  %3129 = vst [vmem:[%s4959_s11 + $0x30] sm:$0xff] %v3065_v50  ;;  %v3454_v14 = vadd.f32 %v1581_v60, %v4945_v46  ;;  %v3486_v39 = vadd.f32 %v2963_v12, %v4947_v47  ;;  %v1583_v36 = vpop.f32.mrb[5].mxu0  ;;  %v2965_v59 = vpop.f32.mrb[5].mxu1 }
 0x24d   : > { %3128 = vst [vmem:[%s4959_s11 + $0x28] sm:$0xff] %v3064_v40  ;;  %3130 = vst [vmem:[%s4959_s11 + $0x38] sm:$0xff] %v3066_v54  ;;  %v3455_v53 = vadd.f32 %v1583_v36, %v4949_v56  ;;  %v3487_v16 = vadd.f32 %v2965_v59, %v4951_v10 }
 0x24e   : > { %v3067_v20 = vmax.f32 %v3454_v14, 0.0  ;;  %v3069_v11 = vmax.f32 %v3486_v39, 0.0 }
 0x24f   : > { %v3068_v13 = vmax.f32 %v3455_v53, 0.0  ;;  %v3070_v18 = vmax.f32 %v3487_v16, 0.0  ;;  %v1588_v61 = vpop.f32.mrb[6].mxu0  ;;  %v2970_v5 = vpop.f32.mrb[6].mxu1 }
 0x250   : > { %3131 = vst [vmem:[%s4959_s11 + $0x40] sm:$0xff] %v3067_v20  ;;  %3133 = vst [vmem:[%s4959_s11 + $0x50] sm:$0xff] %v3069_v11  ;;  %v3456_v38 = vadd.f32 %v1588_v61, %v4945_v46  ;;  %v3488_v28 = vadd.f32 %v2970_v5, %v4947_v47  ;;  %v1590_v58 = vpop.f32.mrb[7].mxu0  ;;  %v2972_v44 = vpop.f32.mrb[7].mxu1 }
 0x251   : > { %3132 = vst [vmem:[%s4959_s11 + $0x48] sm:$0xff] %v3068_v13  ;;  %3134 = vst [vmem:[%s4959_s11 + $0x58] sm:$0xff] %v3070_v18  ;;  %v3457_v3 = vadd.f32 %v1590_v58, %v4949_v56  ;;  %v3489_v45 = vadd.f32 %v2972_v44, %v4951_v10 }
 0x252   : > { %v3071_v22 = vmax.f32 %v3456_v38, 0.0  ;;  %v3073_v17 = vmax.f32 %v3488_v28, 0.0 }
 0x253   : > { %v3072_v9 = vmax.f32 %v3457_v3, 0.0  ;;  %v3074_v62 = vmax.f32 %v3489_v45, 0.0  ;;  %v1595_v2 = vpop.f32.mrb[8].mxu0  ;;  %v2977_v29 = vpop.f32.mrb[8].mxu1 }
 0x254   : > { %3135 = vst [vmem:[%s4959_s11 + $0x60] sm:$0xff] %v3071_v22  ;;  %3137 = vst [vmem:[%s4959_s11 + $0x70] sm:$0xff] %v3073_v17  ;;  %v3458_v43 = vadd.f32 %v1595_v2, %v4945_v46  ;;  %v3490_v23 = vadd.f32 %v2977_v29, %v4947_v47  ;;  %v1597_v30 = vpop.f32.mrb[9].mxu0  ;;  %v2979_v1 = vpop.f32.mrb[9].mxu1 }
 0x255   : > { %3136 = vst [vmem:[%s4959_s11 + $0x68] sm:$0xff] %v3072_v9  ;;  %3138 = vst [vmem:[%s4959_s11 + $0x78] sm:$0xff] %v3074_v62  ;;  %v3459_v48 = vadd.f32 %v1597_v30, %v4949_v56  ;;  %v3491_v27 = vadd.f32 %v2979_v1, %v4951_v10 }
 0x256   : > { %v3075_v34 = vmax.f32 %v3458_v43, 0.0  ;;  %v3077_v35 = vmax.f32 %v3490_v23, 0.0 }
 0x257   : > { %v3076_v41 = vmax.f32 %v3459_v48, 0.0  ;;  %v3078_v42 = vmax.f32 %v3491_v27, 0.0  ;;  %v1602_v57 = vpop.f32.mrb[10].mxu0  ;;  %v2984_v63 = vpop.f32.mrb[10].mxu1 }
 0x258   : > { %3139 = vst [vmem:[%s4959_s11 + $0x80] sm:$0xff] %v3075_v34  ;;  %3141 = vst [vmem:[%s4959_s11 + $0x90] sm:$0xff] %v3077_v35  ;;  %v3460_v0 = vadd.f32 %v1602_v57, %v4945_v46  ;;  %v3492_v4 = vadd.f32 %v2984_v63, %v4947_v47  ;;  %v1604_v55 = vpop.f32.mrb[11].mxu0  ;;  %v2986_v51 = vpop.f32.mrb[11].mxu1 }
 0x259   : > { %3140 = vst [vmem:[%s4959_s11 + $0x88] sm:$0xff] %v3076_v41  ;;  %3142 = vst [vmem:[%s4959_s11 + $0x98] sm:$0xff] %v3078_v42  ;;  %v3461_v6 = vadd.f32 %v1604_v55, %v4949_v56  ;;  %v3493_v21 = vadd.f32 %v2986_v51, %v4951_v10 }
 0x25a   : > { %v3079_v7 = vmax.f32 %v3460_v0, 0.0  ;;  %v3081_v8 = vmax.f32 %v3492_v4, 0.0 }
 0x25b   : > { %v3080_v24 = vmax.f32 %v3461_v6, 0.0  ;;  %v3082_v25 = vmax.f32 %v3493_v21, 0.0  ;;  %v1609_v32 = vpop.f32.mrb[12].mxu0  ;;  %v2991_v33 = vpop.f32.mrb[12].mxu1 }
 0x25c   : > { %3143 = vst [vmem:[%s4959_s11 + $0xa0] sm:$0xff] %v3079_v7  ;;  %3145 = vst [vmem:[%s4959_s11 + $0xb0] sm:$0xff] %v3081_v8  ;;  %v3462_v37 = vadd.f32 %v1609_v32, %v4945_v46  ;;  %v3494_v52 = vadd.f32 %v2991_v33, %v4947_v47  ;;  %v1611_v31 = vpop.f32.mrb[13].mxu0  ;;  %v2993_v26 = vpop.f32.mrb[13].mxu1 }
 0x25d   : > { %3144 = vst [vmem:[%s4959_s11 + $0xa8] sm:$0xff] %v3080_v24  ;;  %3146 = vst [vmem:[%s4959_s11 + $0xb8] sm:$0xff] %v3082_v25  ;;  %v3463_v19 = vadd.f32 %v1611_v31, %v4949_v56  ;;  %v3495_v49 = vadd.f32 %v2993_v26, %v4951_v10 }
 0x25e   : > { %v3083_v15 = vmax.f32 %v3462_v37, 0.0  ;;  %v3085_v50 = vmax.f32 %v3494_v52, 0.0 }
 0x25f   : > { %v3084_v40 = vmax.f32 %v3463_v19, 0.0  ;;  %v3086_v54 = vmax.f32 %v3495_v49, 0.0  ;;  %v1616_v60 = vpop.f32.mrb[14].mxu0  ;;  %v2998_v12 = vpop.f32.mrb[14].mxu1 }
 0x260   : > { %3147 = vst [vmem:[%s4959_s11 + $0xc0] sm:$0xff] %v3083_v15  ;;  %3149 = vst [vmem:[%s4959_s11 + $0xd0] sm:$0xff] %v3085_v50  ;;  %v3464_v14 = vadd.f32 %v1616_v60, %v4945_v46  ;;  %v3496_v39 = vadd.f32 %v2998_v12, %v4947_v47  ;;  %v1618_v36 = vpop.f32.mrb[15].mxu0  ;;  %v3000_v59 = vpop.f32.mrb[15].mxu1 }
 0x261   : > { %3148 = vst [vmem:[%s4959_s11 + $0xc8] sm:$0xff] %v3084_v40  ;;  %3150 = vst [vmem:[%s4959_s11 + $0xd8] sm:$0xff] %v3086_v54  ;;  %v3465_v53 = vadd.f32 %v1618_v36, %v4949_v56  ;;  %v3497_v16 = vadd.f32 %v3000_v59, %v4951_v10 }
 0x262   : > { %v3087_v20 = vmax.f32 %v3464_v14, 0.0  ;;  %v3089_v11 = vmax.f32 %v3496_v39, 0.0 }
 0x263   : > { %v3088_v13 = vmax.f32 %v3465_v53, 0.0  ;;  %v3090_v18 = vmax.f32 %v3497_v16, 0.0  ;;  %v1623_v61 = vpop.f32.mrb[16].mxu0  ;;  %v3005_v5 = vpop.f32.mrb[16].mxu1 }
 0x264   : > { %3151 = vst [vmem:[%s4959_s11 + $0xe0] sm:$0xff] %v3087_v20  ;;  %3153 = vst [vmem:[%s4959_s11 + $0xf0] sm:$0xff] %v3089_v11  ;;  %v3466_v38 = vadd.f32 %v1623_v61, %v4945_v46  ;;  %v3498_v28 = vadd.f32 %v3005_v5, %v4947_v47  ;;  %v1625_v58 = vpop.f32.mrb[17].mxu0  ;;  %v3007_v44 = vpop.f32.mrb[17].mxu1 }
 0x265   : > { %3152 = vst [vmem:[%s4959_s11 + $0xe8] sm:$0xff] %v3088_v13  ;;  %3154 = vst [vmem:[%s4959_s11 + $0xf8] sm:$0xff] %v3090_v18  ;;  %v3467_v3 = vadd.f32 %v1625_v58, %v4949_v56  ;;  %v3499_v45 = vadd.f32 %v3007_v44, %v4951_v10 }
 0x266   : > { %v3091_v22 = vmax.f32 %v3466_v38, 0.0  ;;  %v3093_v17 = vmax.f32 %v3498_v28, 0.0 }
 0x267   : > { %v3092_v9 = vmax.f32 %v3467_v3, 0.0  ;;  %v3094_v62 = vmax.f32 %v3499_v45, 0.0  ;;  %v1630_v2 = vpop.f32.mrb[18].mxu0  ;;  %v3012_v29 = vpop.f32.mrb[18].mxu1 }
 0x268   : > { %3155 = vst [vmem:[%s4959_s11 + $0x100] sm:$0xff] %v3091_v22  ;;  %3157 = vst [vmem:[%s4959_s11 + $0x110] sm:$0xff] %v3093_v17  ;;  %v3468_v43 = vadd.f32 %v1630_v2, %v4945_v46  ;;  %v3500_v23 = vadd.f32 %v3012_v29, %v4947_v47  ;;  %v1632_v30 = vpop.f32.mrb[19].mxu0  ;;  %v3014_v1 = vpop.f32.mrb[19].mxu1 }
 0x269   : > { %3156 = vst [vmem:[%s4959_s11 + $0x108] sm:$0xff] %v3092_v9  ;;  %3158 = vst [vmem:[%s4959_s11 + $0x118] sm:$0xff] %v3094_v62  ;;  %v3469_v48 = vadd.f32 %v1632_v30, %v4949_v56  ;;  %v3501_v27 = vadd.f32 %v3014_v1, %v4951_v10 }
 0x26a   : > { %v3095_v34 = vmax.f32 %v3468_v43, 0.0  ;;  %v3097_v35 = vmax.f32 %v3500_v23, 0.0 }
 0x26b   : > { %v3096_v41 = vmax.f32 %v3469_v48, 0.0  ;;  %v3098_v42 = vmax.f32 %v3501_v27, 0.0  ;;  %v1637_v57 = vpop.f32.mrb[20].mxu0  ;;  %v3019_v63 = vpop.f32.mrb[20].mxu1 }
 0x26c   : > { %3159 = vst [vmem:[%s4959_s11 + $0x120] sm:$0xff] %v3095_v34  ;;  %3161 = vst [vmem:[%s4959_s11 + $0x130] sm:$0xff] %v3097_v35  ;;  %v3470_v0 = vadd.f32 %v1637_v57, %v4945_v46  ;;  %v3502_v4 = vadd.f32 %v3019_v63, %v4947_v47  ;;  %v1639_v55 = vpop.f32.mrb[21].mxu0  ;;  %v3021_v51 = vpop.f32.mrb[21].mxu1 }
 0x26d   : > { %3160 = vst [vmem:[%s4959_s11 + $0x128] sm:$0xff] %v3096_v41  ;;  %3162 = vst [vmem:[%s4959_s11 + $0x138] sm:$0xff] %v3098_v42  ;;  %v3471_v6 = vadd.f32 %v1639_v55, %v4949_v56  ;;  %v3503_v21 = vadd.f32 %v3021_v51, %v4951_v10 }
 0x26e   : > { %v3099_v7 = vmax.f32 %v3470_v0, 0.0  ;;  %v3101_v8 = vmax.f32 %v3502_v4, 0.0 }
 0x26f   : > { %v3100_v24 = vmax.f32 %v3471_v6, 0.0  ;;  %v3102_v25 = vmax.f32 %v3503_v21, 0.0  ;;  %v1644_v32 = vpop.f32.mrb[22].mxu0  ;;  %v3026_v33 = vpop.f32.mrb[22].mxu1 }
 0x270   : > { %3163 = vst [vmem:[%s4959_s11 + $0x140] sm:$0xff] %v3099_v7  ;;  %3165 = vst [vmem:[%s4959_s11 + $0x150] sm:$0xff] %v3101_v8  ;;  %v3472_v37 = vadd.f32 %v1644_v32, %v4945_v46  ;;  %v3504_v52 = vadd.f32 %v3026_v33, %v4947_v47  ;;  %v1646_v31 = vpop.f32.mrb[23].mxu0  ;;  %v3028_v26 = vpop.f32.mrb[23].mxu1 }
 0x271   : > { %3164 = vst [vmem:[%s4959_s11 + $0x148] sm:$0xff] %v3100_v24  ;;  %3166 = vst [vmem:[%s4959_s11 + $0x158] sm:$0xff] %v3102_v25  ;;  %v3473_v19 = vadd.f32 %v1646_v31, %v4949_v56  ;;  %v3505_v49 = vadd.f32 %v3028_v26, %v4951_v10 }
 0x272   : > { %v3103_v15 = vmax.f32 %v3472_v37, 0.0  ;;  %v3105_v50 = vmax.f32 %v3504_v52, 0.0 }
 0x273   : > { %v3104_v40 = vmax.f32 %v3473_v19, 0.0  ;;  %v3106_v54 = vmax.f32 %v3505_v49, 0.0  ;;  %v1651_v60 = vpop.f32.mrb[24].mxu0  ;;  %v3033_v12 = vpop.f32.mrb[24].mxu1 }
 0x274   : > { %3167 = vst [vmem:[%s4959_s11 + $0x160] sm:$0xff] %v3103_v15  ;;  %3169 = vst [vmem:[%s4959_s11 + $0x170] sm:$0xff] %v3105_v50  ;;  %v3474_v14 = vadd.f32 %v1651_v60, %v4945_v46  ;;  %v3506_v39 = vadd.f32 %v3033_v12, %v4947_v47  ;;  %v1653_v36 = vpop.f32.mrb[25].mxu0  ;;  %v3035_v59 = vpop.f32.mrb[25].mxu1 }
 0x275   : > { %3168 = vst [vmem:[%s4959_s11 + $0x168] sm:$0xff] %v3104_v40  ;;  %3170 = vst [vmem:[%s4959_s11 + $0x178] sm:$0xff] %v3106_v54  ;;  %v3475_v53 = vadd.f32 %v1653_v36, %v4949_v56  ;;  %v3507_v16 = vadd.f32 %v3035_v59, %v4951_v10 }
 0x276   : > { %v3107_v20 = vmax.f32 %v3474_v14, 0.0  ;;  %v3109_v11 = vmax.f32 %v3506_v39, 0.0 }
 0x277   : > { %v3108_v13 = vmax.f32 %v3475_v53, 0.0  ;;  %v3110_v18 = vmax.f32 %v3507_v16, 0.0  ;;  %v1658_v61 = vpop.f32.mrb[26].mxu0  ;;  %v3040_v5 = vpop.f32.mrb[26].mxu1 }
 0x278   : > { %3171 = vst [vmem:[%s4959_s11 + $0x180] sm:$0xff] %v3107_v20  ;;  %3173 = vst [vmem:[%s4959_s11 + $0x190] sm:$0xff] %v3109_v11  ;;  %v3476_v38 = vadd.f32 %v1658_v61, %v4945_v46  ;;  %v3508_v28 = vadd.f32 %v3040_v5, %v4947_v47  ;;  %v1660_v58 = vpop.f32.mrb[27].mxu0  ;;  %v3042_v44 = vpop.f32.mrb[27].mxu1 }
 0x279   : > { %3172 = vst [vmem:[%s4959_s11 + $0x188] sm:$0xff] %v3108_v13  ;;  %3174 = vst [vmem:[%s4959_s11 + $0x198] sm:$0xff] %v3110_v18  ;;  %v3477_v3 = vadd.f32 %v1660_v58, %v4949_v56  ;;  %v3509_v45 = vadd.f32 %v3042_v44, %v4951_v10 }
 0x27a   : > { %v3111_v22 = vmax.f32 %v3476_v38, 0.0  ;;  %v3113_v17 = vmax.f32 %v3508_v28, 0.0 }
 0x27b   : > { %v3112_v9 = vmax.f32 %v3477_v3, 0.0  ;;  %v3114_v62 = vmax.f32 %v3509_v45, 0.0  ;;  %v1665_v2 = vpop.f32.mrb[28].mxu0  ;;  %v3047_v29 = vpop.f32.mrb[28].mxu1 }
 0x27c   : > { %3175 = vst [vmem:[%s4959_s11 + $0x1a0] sm:$0xff] %v3111_v22  ;;  %3177 = vst [vmem:[%s4959_s11 + $0x1b0] sm:$0xff] %v3113_v17  ;;  %v3478_v43 = vadd.f32 %v1665_v2, %v4945_v46  ;;  %v3510_v23 = vadd.f32 %v3047_v29, %v4947_v47  ;;  %v1667_v30 = vpop.f32.mrb[29].mxu0  ;;  %v3049_v1 = vpop.f32.mrb[29].mxu1 }
 0x27d   : > { %3176 = vst [vmem:[%s4959_s11 + $0x1a8] sm:$0xff] %v3112_v9  ;;  %3178 = vst [vmem:[%s4959_s11 + $0x1b8] sm:$0xff] %v3114_v62  ;;  %v3479_v48 = vadd.f32 %v1667_v30, %v4949_v56  ;;  %v3511_v27 = vadd.f32 %v3049_v1, %v4951_v10 }
 0x27e   : > { %v3115_v34 = vmax.f32 %v3478_v43, 0.0  ;;  %v3117_v35 = vmax.f32 %v3510_v23, 0.0 }
 0x27f   : > { %v3116_v41 = vmax.f32 %v3479_v48, 0.0  ;;  %v3118_v42 = vmax.f32 %v3511_v27, 0.0  ;;  %v1672_v57 = vpop.f32.mrb[30].mxu0  ;;  %v3054_v63 = vpop.f32.mrb[30].mxu1 }
 0x280   : > { %3179 = vst [vmem:[%s4959_s11 + $0x1c0] sm:$0xff] %v3115_v34  ;;  %3181 = vst [vmem:[%s4959_s11 + $0x1d0] sm:$0xff] %v3117_v35  ;;  %v3480_v0 = vadd.f32 %v1672_v57, %v4945_v46  ;;  %v3512_v4 = vadd.f32 %v3054_v63, %v4947_v47  ;;  %v1674_v55 = vpop.f32.mrb[31].mxu0  ;;  %v3056_v51 = vpop.f32.mrb[31].mxu1 }
 0x281   : > { %3180 = vst [vmem:[%s4959_s11 + $0x1c8] sm:$0xff] %v3116_v41  ;;  %3182 = vst [vmem:[%s4959_s11 + $0x1d8] sm:$0xff] %v3118_v42  ;;  %v3481_v6 = vadd.f32 %v1674_v55, %v4949_v56  ;;  %v3513_v21 = vadd.f32 %v3056_v51, %v4951_v10 }
 0x282   : > { %v3119_v7 = vmax.f32 %v3480_v0, 0.0  ;;  %v3121_v8 = vmax.f32 %v3512_v4, 0.0 }
 0x283   : > { %v3120_v24 = vmax.f32 %v3481_v6, 0.0  ;;  %v3122_v25 = vmax.f32 %v3513_v21, 0.0 }
 0x284   : > { %3183 = vst [vmem:[%s4959_s11 + $0x1e0] sm:$0xff] %v3119_v7  ;;  %3185 = vst [vmem:[%s4959_s11 + $0x1f0] sm:$0xff] %v3121_v8 }
 0x285   : > { %3184 = vst [vmem:[%s4959_s11 + $0x1e8] sm:$0xff] %v3120_v24  ;;  %3186 = vst [vmem:[%s4959_s11 + $0x1f8] sm:$0xff] %v3122_v25 }
 0x286 PF: > { %s13_s12 = sadd.s32 1, %s3849_s12  }
 0x287   : > { %p10_p4 = scmp.ge.s32.totalorder %s13_s12, 4  }
 0x289   :  { %12 = sbr.rel (!%p10_p4) target bundleno = 1 (0x1), region = 62 }

</bundles_post_ra>
